<compile_context>
chip_gen: v7x
topology: tpu7x:2x2x1
jax: 0.10.0
libtpu: 0.0.40
codegen_flags: <defaults>
</compile_context>

<pallas_src>
import math

import jax
import jax.numpy as jnp
from jax.experimental import pallas as pl
from jax.experimental.pallas import tpu as pltpu

# -----------------------------------------------------------------------------
# Small config (shapes consistent with the module, scaled down)
# -----------------------------------------------------------------------------
BATCH       = 2
IN_CHANNELS = 4
IMG_SIZE    = (16, 16)          # (H, W)
PATCH       = 8
D_MODEL     = 32
NUM_LAYERS  = 2
NHEAD       = 4
DIM_FF      = 64
NUM_CLASSES = 10
LN_EPS      = 1e-5

NUM_PATCHES = (IMG_SIZE[0] // PATCH) * (IMG_SIZE[1] // PATCH)   # 4
SEQ         = NUM_PATCHES + 1                                   # 5 (cls + patches)
HEAD_DIM    = D_MODEL // NHEAD                                  # 8
BS_TOTAL    = BATCH * SEQ                                       # 10 rows in the slab
CPP         = IN_CHANNELS * PATCH * PATCH                       # 256 patch features
FC_PAD      = 128                                               # lane-dense logits slab

# Augmented patch matrix: [patch features | one-hot row id | pad] (lane aligned)
K_AUG = ((CPP + BS_TOTAL + 127) // 128) * 128                   # 384

# Const-slab row layout (cols = FC_PAD lanes)
R_FCW      = K_AUG                                              # fc weight rows
R_LNF_G    = R_FCW + D_MODEL                                    # final LN gamma
R_LNF_B    = R_LNF_G + 1                                        # final LN beta
R_FCB      = R_LNF_B + 1                                        # fc bias
CONST_ROWS = ((R_FCB + 1 + 7) // 8) * 8                         # 424

# Per-layer weight slab: rows 0:D  -> [in_w | out_w | ff1_w], rows D:D+FF -> ff2_w
LW_ROWS = D_MODEL + DIM_FF                                      # 96
LW_COLS = ((4 * D_MODEL + DIM_FF + 127) // 128) * 128           # 256
# Per-layer vector slab: 8 rows x 128 lanes (biases + LN params)
LV_ROWS, LV_COLS = 8, 128

OUT_ROWS = max(8, ((BATCH + 7) // 8) * 8)                       # full sublane tile


# -----------------------------------------------------------------------------
# In-kernel helpers
# -----------------------------------------------------------------------------
def _layernorm(y, g, b, eps):
    mu = jnp.mean(y, axis=-1, keepdims=True)
    var = jnp.mean((y - mu) ** 2, axis=-1, keepdims=True)
    return (y - mu) * jax.lax.rsqrt(var + eps) * g + b


# -----------------------------------------------------------------------------
# The single fused ViT kernel
# -----------------------------------------------------------------------------
def _vit_kernel(patches_ref, const_ref, lw_ref, lv_ref, out_ref):
    f32 = jnp.float32
    scale = 1.0 / math.sqrt(HEAD_DIM)

    # ---- constant selection / segment / permutation matrices (built once) ----
    # seg (D, H): block-diagonal 0/1, seg[d, h] = 1 iff lane d belongs to head h.
    d_i = jax.lax.broadcasted_iota(jnp.int32, (D_MODEL, NHEAD), 0)
    h_i = jax.lax.broadcasted_iota(jnp.int32, (D_MODEL, NHEAD), 1)
    seg = jnp.logical_and(d_i >= h_i * HEAD_DIM,
                          d_i < (h_i + 1) * HEAD_DIM).astype(f32)
    # seg_t (H, D): broadcast per-head weights back to full D_MODEL width.
    h_j = jax.lax.broadcasted_iota(jnp.int32, (NHEAD, D_MODEL), 0)
    d_j = jax.lax.broadcasted_iota(jnp.int32, (NHEAD, D_MODEL), 1)
    seg_t = jnp.logical_and(d_j >= h_j * HEAD_DIM,
                            d_j < (h_j + 1) * HEAD_DIM).astype(f32)
    # Batch-shift permutations: perm_j @ x gives rows of batch (b+j) % BATCH at
    # the same token position (keeps everything in slab form, no sublane moves).
    r_i = jax.lax.broadcasted_iota(jnp.int32, (BS_TOTAL, BS_TOTAL), 0)
    c_i = jax.lax.broadcasted_iota(jnp.int32, (BS_TOTAL, BS_TOTAL), 1)
    perms = []
    for j in range(1, BATCH):
        tgt = r_i + j * SEQ
        tgt = jnp.where(tgt >= BS_TOTAL, tgt - BS_TOTAL, tgt)
        perms.append((c_i == tgt).astype(f32))
    # cls-row selector (OUT_ROWS, BS): row b picks slab row b*SEQ (b < BATCH).
    b_i = jax.lax.broadcasted_iota(jnp.int32, (OUT_ROWS, BS_TOTAL), 0)
    s_i = jax.lax.broadcasted_iota(jnp.int32, (OUT_ROWS, BS_TOTAL), 1)
    sel = (s_i == b_i * SEQ).astype(f32)

    # ---- params from consolidated slabs --------------------------------------
    patch_w = const_ref[0:K_AUG, 0:D_MODEL]                 # (K_AUG, D) aug. embed weight
    fc_w    = const_ref[R_FCW:R_FCW + D_MODEL, :]           # (D, FC_PAD)
    lnf_g   = const_ref[R_LNF_G:R_LNF_G + 1, 0:D_MODEL]     # (1, D)
    lnf_b   = const_ref[R_LNF_B:R_LNF_B + 1, 0:D_MODEL]     # (1, D)
    fc_b    = const_ref[R_FCB:R_FCB + 1, :]                 # (1, FC_PAD)

    # ---- patch embed + cls token + positional embedding: ONE matmul ----------
    # (cls token and pos-embed are folded into the augmented columns/rows).
    x = jnp.dot(patches_ref[...], patch_w, preferred_element_type=f32)  # (BS, D)
    # dropout -> identity (eval mode)

    # ---- transformer encoder stack (unrolled, weights VMEM resident) ---------
    # TODO(synk): at real ViT scale, stream bf16 per-layer weights via a grid
    # axis with pl.Buffered(2) (v7x: 64 MiB VMEM) and add a "parallel" grid axis
    # over token blocks so the second TensorCore is used.
    for l in range(NUM_LAYERS):
        in_w  = lw_ref[l, 0:D_MODEL, 0:3 * D_MODEL]                         # (D, 3D)
        out_w = lw_ref[l, 0:D_MODEL, 3 * D_MODEL:4 * D_MODEL]               # (D, D)
        ff1_w = lw_ref[l, 0:D_MODEL, 4 * D_MODEL:4 * D_MODEL + DIM_FF]      # (D, FF)
        ff2_w = lw_ref[l, D_MODEL:D_MODEL + DIM_FF, 0:D_MODEL]              # (FF, D)
        in_b  = lv_ref[l, 0:1, 0:3 * D_MODEL]
        out_b = lv_ref[l, 1:2, 0:D_MODEL]
        ln1_g = lv_ref[l, 2:3, 0:D_MODEL]
        ln1_b = lv_ref[l, 3:4, 0:D_MODEL]
        ff1_b = lv_ref[l, 4:5, 0:DIM_FF]
        ff2_b = lv_ref[l, 5:6, 0:D_MODEL]
        ln2_g = lv_ref[l, 6:7, 0:D_MODEL]
        ln2_b = lv_ref[l, 7:8, 0:D_MODEL]

        # fused QKV projection: ONE (BS, D) @ (D, 3D) matmul
        qkv = jnp.dot(x, in_w, preferred_element_type=f32) + in_b           # (BS, 3D)
        q = qkv[:, 0:D_MODEL] * scale                                       # pre-scaled q
        k = qkv[:, D_MODEL:2 * D_MODEL]
        v = qkv[:, 2 * D_MODEL:3 * D_MODEL]

        # --- attention across the real batch axis (batch_first bug) ----------
        # partner rows per shift j (batch (b+j)%BATCH, same token position)
        k_parts = [k] + [jnp.dot(pm, k, preferred_element_type=f32) for pm in perms]
        v_parts = [v] + [jnp.dot(pm, v, preferred_element_type=f32) for pm in perms]

        # per-head scores via block-diagonal segment matmul -> (BS, NHEAD) each
        s = [jnp.dot(q * kp, seg, preferred_element_type=f32) for kp in k_parts]

        m = s[0]
        for sj in s[1:]:
            m = jnp.maximum(m, sj)
        es = [jnp.exp(sj - m) for sj in s]
        denom = es[0]
        for ej in es[1:]:
            denom = denom + ej
        inv = pl.reciprocal(denom, approx=True)          # EUP fast path

        # broadcast per-head weights to full width, full-vreg-width VPU FMAs
        ao = jnp.dot(es[0] * inv, seg_t, preferred_element_type=f32) * v_parts[0]
        for ej, vp in zip(es[1:], v_parts[1:]):
            ao = ao + jnp.dot(ej * inv, seg_t, preferred_element_type=f32) * vp

        # --- out-proj + residual + LayerNorm1 (post-norm) --------------------
        y = x + jnp.dot(ao, out_w, preferred_element_type=f32) + out_b
        y = _layernorm(y, ln1_g, ln1_b, LN_EPS)

        # --- FFN (ReLU) + residual + LayerNorm2 ------------------------------
        hid = jnp.maximum(jnp.dot(y, ff1_w, preferred_element_type=f32) + ff1_b, 0.0)
        z = y + jnp.dot(hid, ff2_w, preferred_element_type=f32) + ff2_b
        x = _layernorm(z, ln2_g, ln2_b, LN_EPS)

    # ---- classification head: select cls rows (MXU), final LN, fc ------------
    cls_rows = jnp.dot(sel, x, preferred_element_type=f32)       # (OUT_ROWS, D); rows >= BATCH are zero filler
    cls_ln = _layernorm(cls_rows, lnf_g, lnf_b, LN_EPS)
    out_ref[...] = jnp.dot(cls_ln, fc_w, preferred_element_type=f32) + fc_b


# -----------------------------------------------------------------------------
# Wrapper: layout plumbing only (patchify, operand consolidation, fc padding)
# -----------------------------------------------------------------------------
def _full_spec(shape):
    nd = len(shape)
    return pl.BlockSpec(shape, lambda i, nd=nd: (0,) * nd)


def vit_forward_impl(params, x):
    # x is NCHW (B, C, H, W) float32 -- same layout as the PyTorch module.
    B, C, Hh, Ww = x.shape
    p = PATCH
    hp, wp = Hh // p, Ww // p

    # stride-p "patchify" conv rewritten as patch extraction (pure layout).
    # TODO(synk): fold this reshape/transpose into the operand slab to skip the
    # tiny pre-kernel HBM round trip.
    patches = x.reshape(B, C, hp, p, wp, p).transpose(0, 2, 4, 1, 3, 5)
    patches = patches.reshape(B, hp * wp, CPP).astype(jnp.float32)          # (B, P, CPP)

    # Activation slab rows ordered (b, s): s=0 is the cls row (zero features).
    feat = jnp.zeros((B, SEQ, CPP), jnp.float32).at[:, 1:, :].set(patches)
    feat = feat.reshape(BS_TOTAL, CPP)
    onehot = jnp.eye(BS_TOTAL, dtype=jnp.float32)                           # row-id indicator
    pad = jnp.zeros((BS_TOTAL, K_AUG - CPP - BS_TOTAL), jnp.float32)
    patches_aug = jnp.concatenate([feat, onehot, pad], axis=1)              # (BS, K_AUG)

    # Augmented embed weight: patch_w on top, per-row additive constants
    # (cls_token + pe[0] for cls rows, conv bias + pe[s] for patch rows) below.
    pe = params['pos_embed'].reshape(SEQ, D_MODEL)
    cls = params['cls_token'].reshape(1, D_MODEL)
    pb = params['patch_b'].reshape(1, D_MODEL)
    row_add = jnp.concatenate([cls + pe[0:1], pe[1:] + pb], axis=0)         # (SEQ, D)
    row_add = jnp.tile(row_add, (B, 1))                                     # (BS, D)
    patch_w_aug = (jnp.zeros((K_AUG, D_MODEL), jnp.float32)
                   .at[0:CPP].set(params['patch_w'])
                   .at[CPP:CPP + BS_TOTAL].set(row_add))

    # Const slab: patch_w_aug | fc_w | final LN | fc_b (all params, lane padded).
    const = jnp.zeros((CONST_ROWS, FC_PAD), jnp.float32)
    const = const.at[0:K_AUG, 0:D_MODEL].set(patch_w_aug)
    const = const.at[R_FCW:R_FCW + D_MODEL, 0:NUM_CLASSES].set(params['fc_w'])
    const = const.at[R_LNF_G, 0:D_MODEL].set(params['ln_g'].reshape(-1))
    const = const.at[R_LNF_B, 0:D_MODEL].set(params['ln_b'].reshape(-1))
    const = const.at[R_FCB, 0:NUM_CLASSES].set(params['fc_b'].reshape(-1))

    # Per-layer matmul-weight slab and bias/LN-vector slab (params-only plumbing).
    lw = jnp.zeros((NUM_LAYERS, LW_ROWS, LW_COLS), jnp.float32)
    lv = jnp.zeros((NUM_LAYERS, LV_ROWS, LV_COLS), jnp.float32)
    for l, pr in enumerate(params['layers']):
        lw = lw.at[l, 0:D_MODEL, 0:3 * D_MODEL].set(pr['in_w'])
        lw = lw.at[l, 0:D_MODEL, 3 * D_MODEL:4 * D_MODEL].set(pr['out_w'])
        lw = lw.at[l, 0:D_MODEL, 4 * D_MODEL:4 * D_MODEL + DIM_FF].set(pr['ff1_w'])
        lw = lw.at[l, D_MODEL:D_MODEL + DIM_FF, 0:D_MODEL].set(pr['ff2_w'])
        lv = lv.at[l, 0, 0:3 * D_MODEL].set(pr['in_b'].reshape(-1))
        lv = lv.at[l, 1, 0:D_MODEL].set(pr['out_b'].reshape(-1))
        lv = lv.at[l, 2, 0:D_MODEL].set(pr['ln1_g'].reshape(-1))
        lv = lv.at[l, 3, 0:D_MODEL].set(pr['ln1_b'].reshape(-1))
        lv = lv.at[l, 4, 0:DIM_FF].set(pr['ff1_b'].reshape(-1))
        lv = lv.at[l, 5, 0:D_MODEL].set(pr['ff2_b'].reshape(-1))
        lv = lv.at[l, 6, 0:D_MODEL].set(pr['ln2_g'].reshape(-1))
        lv = lv.at[l, 7, 0:D_MODEL].set(pr['ln2_b'].reshape(-1))

    operands = (patches_aug, const, lw, lv)

    # Single fused pallas_call: the full forward pass, VMEM resident.
    logits_pad = pl.pallas_call(
        _vit_kernel,
        out_shape=jax.ShapeDtypeStruct((OUT_ROWS, FC_PAD), jnp.float32),
        grid=(1,),
        in_specs=[_full_spec(op.shape) for op in operands],
        out_specs=_full_spec((OUT_ROWS, FC_PAD)),
        compiler_params=pltpu.CompilerParams(
            dimension_semantics=("arbitrary",)),
    )(*operands)

    return logits_pad[:BATCH, :NUM_CLASSES]


vit_forward = jax.jit(vit_forward_impl)


# -----------------------------------------------------------------------------
# Deterministic parameter init (synthetic; shapes follow the module __init__).
# Weights are stored for x @ W convention (i.e. transposed vs. PyTorch).
# -----------------------------------------------------------------------------
def init_params(key):
    keys = jax.random.split(key, 4 + 6 * NUM_LAYERS)
    ki = iter(keys)

    def w(shape, scale=0.02):
        return scale * jax.random.normal(next(ki), shape, dtype=jnp.float32)

    params = {
        # Conv2d weight (D, C, p, p) stored pre-flattened/transposed as (C*p*p, D)
        'patch_w': w((CPP, D_MODEL)),
        'patch_b': jnp.zeros((1, D_MODEL), jnp.float32),
        'cls_token': jax.random.normal(next(ki), (1, 1, D_MODEL), dtype=jnp.float32),
        'pos_embed': jax.random.normal(next(ki), (1, SEQ, D_MODEL), dtype=jnp.float32),
        'ln_g': jnp.ones((1, D_MODEL), jnp.float32),
        'ln_b': jnp.zeros((1, D_MODEL), jnp.float32),
        'fc_w': w((D_MODEL, NUM_CLASSES)),
        'fc_b': jnp.zeros((1, NUM_CLASSES), jnp.float32),
        'layers': [],
    }
    for _ in range(NUM_LAYERS):
        params['layers'].append({
            'in_w':  w((D_MODEL, 3 * D_MODEL)),     # fused QKV (x @ W)
            'in_b':  jnp.zeros((1, 3 * D_MODEL), jnp.float32),
            'out_w': w((D_MODEL, D_MODEL)),
            'out_b': jnp.zeros((1, D_MODEL), jnp.float32),
            'ln1_g': jnp.ones((1, D_MODEL), jnp.float32),
            'ln1_b': jnp.zeros((1, D_MODEL), jnp.float32),
            'ff1_w': w((D_MODEL, DIM_FF)),
            'ff1_b': jnp.zeros((1, DIM_FF), jnp.float32),
            'ff2_w': w((DIM_FF, D_MODEL)),
            'ff2_b': jnp.zeros((1, D_MODEL), jnp.float32),
            'ln2_g': jnp.ones((1, D_MODEL), jnp.float32),
            'ln2_b': jnp.zeros((1, D_MODEL), jnp.float32),
        })
    return params


if __name__ == "__main__":
    key = jax.random.PRNGKey(0)
    pkey, xkey = jax.random.split(key)
    params = init_params(pkey)
    x = jax.random.normal(
        xkey, (BATCH, IN_CHANNELS, IMG_SIZE[0], IMG_SIZE[1]), dtype=jnp.float32)

    out = vit_forward(params, x)
    out = jax.block_until_ready(out)
    assert out.shape == (BATCH, NUM_CLASSES), out.shape
    assert bool(jnp.all(jnp.isfinite(out)))
    print("KERNEL_OK")
</pallas_src>

<mosaic_0001>
module attributes {stable_mosaic.version = 11 : i64} {
  func.func @_vit_kernel(%arg0: i32, %arg1: memref<10x384xf32, #tpu.memory_space<vmem>>, %arg2: memref<424x128xf32, #tpu.memory_space<vmem>>, %arg3: memref<2x96x256xf32, #tpu.memory_space<vmem>>, %arg4: memref<2x8x128xf32, #tpu.memory_space<vmem>>, %arg5: memref<8x128xf32, #tpu.memory_space<vmem>>) attributes {dimension_semantics = [#tpu.dimension_semantics<arbitrary>], iteration_bounds = array<i64: 1>, scalar_prefetch = 0 : i64, scratch_operands = 0 : i64, tpu.core_type = #tpu.core_type<tc>, window_params = [{pipeline_mode = #tpu.pipeline_mode<synchronous>, transform_indices = @transform_0, window_bounds = array<i64: 10, 384>}, {pipeline_mode = #tpu.pipeline_mode<synchronous>, transform_indices = @transform_1, window_bounds = array<i64: 424, 128>}, {pipeline_mode = #tpu.pipeline_mode<synchronous>, transform_indices = @transform_2, window_bounds = array<i64: 2, 96, 256>}, {pipeline_mode = #tpu.pipeline_mode<synchronous>, transform_indices = @transform_3, window_bounds = array<i64: 2, 8, 128>}, {pipeline_mode = #tpu.pipeline_mode<synchronous>, transform_indices = @transform_4, window_bounds = array<i64: 8, 128>}]} {
    %0 = tpu.iota {dimensions = array<i32: 0>} : vector<32x4xi32>
    %1 = tpu.iota {dimensions = array<i32: 1>} : vector<32x4xi32>
    %c8_i32 = arith.constant 8 : i32
    %2 = vector.broadcast %c8_i32 : i32 to vector<32x4xi32>
    %3 = arith.muli %1, %2 : vector<32x4xi32>
    %4 = arith.cmpi sge, %0, %3 : vector<32x4xi32>
    %c1_i32 = arith.constant 1 : i32
    %5 = vector.broadcast %c1_i32 : i32 to vector<32x4xi32>
    %6 = arith.addi %1, %5 : vector<32x4xi32>
    %c8_i32_0 = arith.constant 8 : i32
    %7 = vector.broadcast %c8_i32_0 : i32 to vector<32x4xi32>
    %8 = arith.muli %6, %7 : vector<32x4xi32>
    %9 = arith.cmpi slt, %0, %8 : vector<32x4xi32>
    %10 = arith.andi %4, %9 : vector<32x4xi1>
    %11 = arith.extui %10 : vector<32x4xi1> to vector<32x4xi32>
    %12 = arith.sitofp %11 : vector<32x4xi32> to vector<32x4xf32>
    %13 = tpu.iota {dimensions = array<i32: 0>} : vector<4x32xi32>
    %14 = tpu.iota {dimensions = array<i32: 1>} : vector<4x32xi32>
    %c8_i32_1 = arith.constant 8 : i32
    %15 = vector.broadcast %c8_i32_1 : i32 to vector<4x32xi32>
    %16 = arith.muli %13, %15 : vector<4x32xi32>
    %17 = arith.cmpi sge, %14, %16 : vector<4x32xi32>
    %c1_i32_2 = arith.constant 1 : i32
    %18 = vector.broadcast %c1_i32_2 : i32 to vector<4x32xi32>
    %19 = arith.addi %13, %18 : vector<4x32xi32>
    %c8_i32_3 = arith.constant 8 : i32
    %20 = vector.broadcast %c8_i32_3 : i32 to vector<4x32xi32>
    %21 = arith.muli %19, %20 : vector<4x32xi32>
    %22 = arith.cmpi slt, %14, %21 : vector<4x32xi32>
    %23 = arith.andi %17, %22 : vector<4x32xi1>
    %24 = arith.extui %23 : vector<4x32xi1> to vector<4x32xi32>
    %25 = arith.sitofp %24 : vector<4x32xi32> to vector<4x32xf32>
    %26 = tpu.iota {dimensions = array<i32: 0>} : vector<10x10xi32>
    %27 = tpu.iota {dimensions = array<i32: 1>} : vector<10x10xi32>
    %c5_i32 = arith.constant 5 : i32
    %28 = vector.broadcast %c5_i32 : i32 to vector<10x10xi32>
    %29 = arith.addi %26, %28 : vector<10x10xi32>
    %c10_i32 = arith.constant 10 : i32
    %30 = vector.broadcast %c10_i32 : i32 to vector<10x10xi32>
    %31 = arith.cmpi sge, %29, %30 : vector<10x10xi32>
    %c10_i32_4 = arith.constant 10 : i32
    %32 = vector.broadcast %c10_i32_4 : i32 to vector<10x10xi32>
    %33 = arith.subi %29, %32 : vector<10x10xi32>
    %34 = arith.select %31, %33, %29 : vector<10x10xi1>, vector<10x10xi32>
    %35 = arith.cmpi eq, %27, %34 : vector<10x10xi32>
    %36 = arith.extui %35 : vector<10x10xi1> to vector<10x10xi32>
    %37 = arith.sitofp %36 : vector<10x10xi32> to vector<10x10xf32>
    %38 = tpu.iota {dimensions = array<i32: 0>} : vector<8x10xi32>
    %39 = tpu.iota {dimensions = array<i32: 1>} : vector<8x10xi32>
    %c5_i32_5 = arith.constant 5 : i32
    %40 = vector.broadcast %c5_i32_5 : i32 to vector<8x10xi32>
    %41 = arith.muli %38, %40 : vector<8x10xi32>
    %42 = arith.cmpi eq, %39, %41 : vector<8x10xi32>
    %43 = arith.extui %42 : vector<8x10xi1> to vector<8x10xi32>
    %44 = arith.sitofp %43 : vector<8x10xi32> to vector<8x10xf32>
    %c0 = arith.constant 0 : index
    %c0_6 = arith.constant 0 : index
    %45 = vector.load %arg2[%c0, %c0_6] : memref<424x128xf32, #tpu.memory_space<vmem>>, vector<384x32xf32>
    %c384 = arith.constant 384 : index
    %c0_7 = arith.constant 0 : index
    %46 = vector.load %arg2[%c384, %c0_7] : memref<424x128xf32, #tpu.memory_space<vmem>>, vector<32x128xf32>
    %c416 = arith.constant 416 : index
    %c0_8 = arith.constant 0 : index
    %47 = vector.load %arg2[%c416, %c0_8] : memref<424x128xf32, #tpu.memory_space<vmem>>, vector<1x32xf32>
    %c417 = arith.constant 417 : index
    %c0_9 = arith.constant 0 : index
    %48 = vector.load %arg2[%c417, %c0_9] : memref<424x128xf32, #tpu.memory_space<vmem>>, vector<1x32xf32>
    %c418 = arith.constant 418 : index
    %c0_10 = arith.constant 0 : index
    %49 = vector.load %arg2[%c418, %c0_10] : memref<424x128xf32, #tpu.memory_space<vmem>>, vector<1x128xf32>
    %c0_11 = arith.constant 0 : index
    %c0_12 = arith.constant 0 : index
    %50 = vector.load %arg1[%c0_11, %c0_12] : memref<10x384xf32, #tpu.memory_space<vmem>>, vector<10x384xf32>
    %cst = arith.constant dense<0.000000e+00> : vector<10x32xf32>
    %51 = tpu.matmul %50, %45, %cst {dimension_numbers = #tpu.dot_dimension_numbers<[1], [0], [0], [1], [0, 0, 1, 1], [], []>} : vector<10x384xf32>, vector<384x32xf32>, vector<10x32xf32> -> vector<10x32xf32>
    %c0_13 = arith.constant 0 : index
    %c0_14 = arith.constant 0 : index
    %c0_15 = arith.constant 0 : index
    %52 = vector.load %arg3[%c0_13, %c0_14, %c0_15] : memref<2x96x256xf32, #tpu.memory_space<vmem>>, vector<1x32x96xf32>
    %53 = vector.shape_cast %52 : vector<1x32x96xf32> to vector<32x96xf32>
    %c0_16 = arith.constant 0 : index
    %c0_17 = arith.constant 0 : index
    %c96 = arith.constant 96 : index
    %54 = vector.load %arg3[%c0_16, %c0_17, %c96] : memref<2x96x256xf32, #tpu.memory_space<vmem>>, vector<1x32x32xf32>
    %55 = vector.shape_cast %54 : vector<1x32x32xf32> to vector<32x32xf32>
    %c0_18 = arith.constant 0 : index
    %c0_19 = arith.constant 0 : index
    %c128 = arith.constant 128 : index
    %56 = vector.load %arg3[%c0_18, %c0_19, %c128] : memref<2x96x256xf32, #tpu.memory_space<vmem>>, vector<1x32x64xf32>
    %57 = vector.shape_cast %56 : vector<1x32x64xf32> to vector<32x64xf32>
    %c0_20 = arith.constant 0 : index
    %c32 = arith.constant 32 : index
    %c0_21 = arith.constant 0 : index
    %58 = vector.load %arg3[%c0_20, %c32, %c0_21] : memref<2x96x256xf32, #tpu.memory_space<vmem>>, vector<1x64x32xf32>
    %59 = vector.shape_cast %58 : vector<1x64x32xf32> to vector<64x32xf32>
    %c0_22 = arith.constant 0 : index
    %c0_23 = arith.constant 0 : index
    %c0_24 = arith.constant 0 : index
    %60 = vector.load %arg4[%c0_22, %c0_23, %c0_24] : memref<2x8x128xf32, #tpu.memory_space<vmem>>, vector<1x1x96xf32>
    %61 = vector.shape_cast %60 : vector<1x1x96xf32> to vector<1x96xf32>
    %c0_25 = arith.constant 0 : index
    %c1 = arith.constant 1 : index
    %c0_26 = arith.constant 0 : index
    %62 = vector.load %arg4[%c0_25, %c1, %c0_26] : memref<2x8x128xf32, #tpu.memory_space<vmem>>, vector<1x1x32xf32>
    %63 = vector.shape_cast %62 : vector<1x1x32xf32> to vector<1x32xf32>
    %c0_27 = arith.constant 0 : index
    %c2 = arith.constant 2 : index
    %c0_28 = arith.constant 0 : index
    %64 = vector.load %arg4[%c0_27, %c2, %c0_28] : memref<2x8x128xf32, #tpu.memory_space<vmem>>, vector<1x1x32xf32>
    %65 = vector.shape_cast %64 : vector<1x1x32xf32> to vector<1x32xf32>
    %c0_29 = arith.constant 0 : index
    %c3 = arith.constant 3 : index
    %c0_30 = arith.constant 0 : index
    %66 = vector.load %arg4[%c0_29, %c3, %c0_30] : memref<2x8x128xf32, #tpu.memory_space<vmem>>, vector<1x1x32xf32>
    %67 = vector.shape_cast %66 : vector<1x1x32xf32> to vector<1x32xf32>
    %c0_31 = arith.constant 0 : index
    %c4 = arith.constant 4 : index
    %c0_32 = arith.constant 0 : index
    %68 = vector.load %arg4[%c0_31, %c4, %c0_32] : memref<2x8x128xf32, #tpu.memory_space<vmem>>, vector<1x1x64xf32>
    %69 = vector.shape_cast %68 : vector<1x1x64xf32> to vector<1x64xf32>
    %c0_33 = arith.constant 0 : index
    %c5 = arith.constant 5 : index
    %c0_34 = arith.constant 0 : index
    %70 = vector.load %arg4[%c0_33, %c5, %c0_34] : memref<2x8x128xf32, #tpu.memory_space<vmem>>, vector<1x1x32xf32>
    %71 = vector.shape_cast %70 : vector<1x1x32xf32> to vector<1x32xf32>
    %c0_35 = arith.constant 0 : index
    %c6 = arith.constant 6 : index
    %c0_36 = arith.constant 0 : index
    %72 = vector.load %arg4[%c0_35, %c6, %c0_36] : memref<2x8x128xf32, #tpu.memory_space<vmem>>, vector<1x1x32xf32>
    %73 = vector.shape_cast %72 : vector<1x1x32xf32> to vector<1x32xf32>
    %c0_37 = arith.constant 0 : index
    %c7 = arith.constant 7 : index
    %c0_38 = arith.constant 0 : index
    %74 = vector.load %arg4[%c0_37, %c7, %c0_38] : memref<2x8x128xf32, #tpu.memory_space<vmem>>, vector<1x1x32xf32>
    %75 = vector.shape_cast %74 : vector<1x1x32xf32> to vector<1x32xf32>
    %cst_39 = arith.constant dense<0.000000e+00> : vector<10x96xf32>
    %76 = tpu.matmul %51, %53, %cst_39 {dimension_numbers = #tpu.dot_dimension_numbers<[1], [0], [0], [1], [0, 0, 1, 1], [], []>} : vector<10x32xf32>, vector<32x96xf32>, vector<10x96xf32> -> vector<10x96xf32>
    %77 = vector.broadcast %61 : vector<1x96xf32> to vector<10x96xf32>
    %78 = arith.addf %76, %77 : vector<10x96xf32>
    %79 = vector.extract_strided_slice %78 {offsets = [0, 0], sizes = [10, 32], strides = [1, 1]} : vector<10x96xf32> to vector<10x32xf32>
    %cst_40 = arith.constant 0.353553385 : f32
    %80 = vector.broadcast %cst_40 : f32 to vector<10x32xf32>
    %81 = arith.mulf %79, %80 : vector<10x32xf32>
    %82 = vector.extract_strided_slice %78 {offsets = [0, 32], sizes = [10, 32], strides = [1, 1]} : vector<10x96xf32> to vector<10x32xf32>
    %83 = vector.extract_strided_slice %78 {offsets = [0, 64], sizes = [10, 32], strides = [1, 1]} : vector<10x96xf32> to vector<10x32xf32>
    %cst_41 = arith.constant dense<0.000000e+00> : vector<10x32xf32>
    %84 = tpu.matmul %37, %82, %cst_41 {dimension_numbers = #tpu.dot_dimension_numbers<[1], [0], [0], [1], [0, 0, 1, 1], [], []>} : vector<10x10xf32>, vector<10x32xf32>, vector<10x32xf32> -> vector<10x32xf32>
    %cst_42 = arith.constant dense<0.000000e+00> : vector<10x32xf32>
    %85 = tpu.matmul %37, %83, %cst_42 {dimension_numbers = #tpu.dot_dimension_numbers<[1], [0], [0], [1], [0, 0, 1, 1], [], []>} : vector<10x10xf32>, vector<10x32xf32>, vector<10x32xf32> -> vector<10x32xf32>
    %86 = arith.mulf %81, %82 : vector<10x32xf32>
    %cst_43 = arith.constant dense<0.000000e+00> : vector<10x4xf32>
    %87 = tpu.matmul %86, %12, %cst_43 {dimension_numbers = #tpu.dot_dimension_numbers<[1], [0], [0], [1], [0, 0, 1, 1], [], []>} : vector<10x32xf32>, vector<32x4xf32>, vector<10x4xf32> -> vector<10x4xf32>
    %88 = arith.mulf %81, %84 : vector<10x32xf32>
    %cst_44 = arith.constant dense<0.000000e+00> : vector<10x4xf32>
    %89 = tpu.matmul %88, %12, %cst_44 {dimension_numbers = #tpu.dot_dimension_numbers<[1], [0], [0], [1], [0, 0, 1, 1], [], []>} : vector<10x32xf32>, vector<32x4xf32>, vector<10x4xf32> -> vector<10x4xf32>
    %90 = arith.maximumf %87, %89 : vector<10x4xf32>
    %91 = arith.subf %87, %90 : vector<10x4xf32>
    %92 = math.exp %91 : vector<10x4xf32>
    %93 = arith.subf %89, %90 : vector<10x4xf32>
    %94 = math.exp %93 : vector<10x4xf32>
    %95 = arith.addf %92, %94 : vector<10x4xf32>
    %96 = tpu.reciprocal %95 {approx = true} : vector<10x4xf32> -> vector<10x4xf32>
    %97 = arith.mulf %92, %96 : vector<10x4xf32>
    %cst_45 = arith.constant dense<0.000000e+00> : vector<10x32xf32>
    %98 = tpu.matmul %97, %25, %cst_45 {dimension_numbers = #tpu.dot_dimension_numbers<[1], [0], [0], [1], [0, 0, 1, 1], [], []>} : vector<10x4xf32>, vector<4x32xf32>, vector<10x32xf32> -> vector<10x32xf32>
    %99 = arith.mulf %98, %83 : vector<10x32xf32>
    %100 = arith.mulf %94, %96 : vector<10x4xf32>
    %cst_46 = arith.constant dense<0.000000e+00> : vector<10x32xf32>
    %101 = tpu.matmul %100, %25, %cst_46 {dimension_numbers = #tpu.dot_dimension_numbers<[1], [0], [0], [1], [0, 0, 1, 1], [], []>} : vector<10x4xf32>, vector<4x32xf32>, vector<10x32xf32> -> vector<10x32xf32>
    %102 = arith.mulf %101, %85 : vector<10x32xf32>
    %103 = arith.addf %99, %102 : vector<10x32xf32>
    %cst_47 = arith.constant dense<0.000000e+00> : vector<10x32xf32>
    %104 = tpu.matmul %103, %55, %cst_47 {dimension_numbers = #tpu.dot_dimension_numbers<[1], [0], [0], [1], [0, 0, 1, 1], [], []>} : vector<10x32xf32>, vector<32x32xf32>, vector<10x32xf32> -> vector<10x32xf32>
    %105 = arith.addf %51, %104 : vector<10x32xf32>
    %106 = vector.broadcast %63 : vector<1x32xf32> to vector<10x32xf32>
    %107 = arith.addf %105, %106 : vector<10x32xf32>
    %cst_48 = arith.constant dense<0.000000e+00> : vector<10xf32>
    %108 = vector.multi_reduction <add>, %107, %cst_48 [1] : vector<10x32xf32> to vector<10xf32>
    %109 = vector.shape_cast %108 : vector<10xf32> to vector<10x1xf32>
    %cst_49 = arith.constant 3.200000e+01 : f32
    %110 = vector.broadcast %cst_49 : f32 to vector<10x1xf32>
    %111 = arith.divf %109, %110 : vector<10x1xf32>
    %112 = vector.broadcast %111 : vector<10x1xf32> to vector<10x32xf32>
    %113 = arith.subf %107, %112 : vector<10x32xf32>
    %114 = arith.mulf %113, %113 : vector<10x32xf32>
    %cst_50 = arith.constant dense<0.000000e+00> : vector<10xf32>
    %115 = vector.multi_reduction <add>, %114, %cst_50 [1] : vector<10x32xf32> to vector<10xf32>
    %116 = vector.shape_cast %115 : vector<10xf32> to vector<10x1xf32>
    %cst_51 = arith.constant 3.200000e+01 : f32
    %117 = vector.broadcast %cst_51 : f32 to vector<10x1xf32>
    %118 = arith.divf %116, %117 : vector<10x1xf32>
    %119 = vector.broadcast %111 : vector<10x1xf32> to vector<10x32xf32>
    %120 = arith.subf %107, %119 : vector<10x32xf32>
    %cst_52 = arith.constant 9.99999974E-6 : f32
    %121 = vector.broadcast %cst_52 : f32 to vector<10x1xf32>
    %122 = arith.addf %118, %121 : vector<10x1xf32>
    %123 = math.rsqrt %122 : vector<10x1xf32>
    %124 = vector.broadcast %123 : vector<10x1xf32> to vector<10x32xf32>
    %125 = arith.mulf %120, %124 : vector<10x32xf32>
    %126 = vector.broadcast %65 : vector<1x32xf32> to vector<10x32xf32>
    %127 = arith.mulf %125, %126 : vector<10x32xf32>
    %128 = vector.broadcast %67 : vector<1x32xf32> to vector<10x32xf32>
    %129 = arith.addf %127, %128 : vector<10x32xf32>
    %cst_53 = arith.constant dense<0.000000e+00> : vector<10x64xf32>
    %130 = tpu.matmul %129, %57, %cst_53 {dimension_numbers = #tpu.dot_dimension_numbers<[1], [0], [0], [1], [0, 0, 1, 1], [], []>} : vector<10x32xf32>, vector<32x64xf32>, vector<10x64xf32> -> vector<10x64xf32>
    %131 = vector.broadcast %69 : vector<1x64xf32> to vector<10x64xf32>
    %132 = arith.addf %130, %131 : vector<10x64xf32>
    %cst_54 = arith.constant 0.000000e+00 : f32
    %133 = vector.broadcast %cst_54 : f32 to vector<10x64xf32>
    %134 = arith.maximumf %132, %133 : vector<10x64xf32>
    %cst_55 = arith.constant dense<0.000000e+00> : vector<10x32xf32>
    %135 = tpu.matmul %134, %59, %cst_55 {dimension_numbers = #tpu.dot_dimension_numbers<[1], [0], [0], [1], [0, 0, 1, 1], [], []>} : vector<10x64xf32>, vector<64x32xf32>, vector<10x32xf32> -> vector<10x32xf32>
    %136 = arith.addf %129, %135 : vector<10x32xf32>
    %137 = vector.broadcast %71 : vector<1x32xf32> to vector<10x32xf32>
    %138 = arith.addf %136, %137 : vector<10x32xf32>
    %cst_56 = arith.constant dense<0.000000e+00> : vector<10xf32>
    %139 = vector.multi_reduction <add>, %138, %cst_56 [1] : vector<10x32xf32> to vector<10xf32>
    %140 = vector.shape_cast %139 : vector<10xf32> to vector<10x1xf32>
    %cst_57 = arith.constant 3.200000e+01 : f32
    %141 = vector.broadcast %cst_57 : f32 to vector<10x1xf32>
    %142 = arith.divf %140, %141 : vector<10x1xf32>
    %143 = vector.broadcast %142 : vector<10x1xf32> to vector<10x32xf32>
    %144 = arith.subf %138, %143 : vector<10x32xf32>
    %145 = arith.mulf %144, %144 : vector<10x32xf32>
    %cst_58 = arith.constant dense<0.000000e+00> : vector<10xf32>
    %146 = vector.multi_reduction <add>, %145, %cst_58 [1] : vector<10x32xf32> to vector<10xf32>
    %147 = vector.shape_cast %146 : vector<10xf32> to vector<10x1xf32>
    %cst_59 = arith.constant 3.200000e+01 : f32
    %148 = vector.broadcast %cst_59 : f32 to vector<10x1xf32>
    %149 = arith.divf %147, %148 : vector<10x1xf32>
    %150 = vector.broadcast %142 : vector<10x1xf32> to vector<10x32xf32>
    %151 = arith.subf %138, %150 : vector<10x32xf32>
    %cst_60 = arith.constant 9.99999974E-6 : f32
    %152 = vector.broadcast %cst_60 : f32 to vector<10x1xf32>
    %153 = arith.addf %149, %152 : vector<10x1xf32>
    %154 = math.rsqrt %153 : vector<10x1xf32>
    %155 = vector.broadcast %154 : vector<10x1xf32> to vector<10x32xf32>
    %156 = arith.mulf %151, %155 : vector<10x32xf32>
    %157 = vector.broadcast %73 : vector<1x32xf32> to vector<10x32xf32>
    %158 = arith.mulf %156, %157 : vector<10x32xf32>
    %159 = vector.broadcast %75 : vector<1x32xf32> to vector<10x32xf32>
    %160 = arith.addf %158, %159 : vector<10x32xf32>
    %c1_61 = arith.constant 1 : index
    %c0_62 = arith.constant 0 : index
    %c0_63 = arith.constant 0 : index
    %161 = vector.load %arg3[%c1_61, %c0_62, %c0_63] : memref<2x96x256xf32, #tpu.memory_space<vmem>>, vector<1x32x96xf32>
    %162 = vector.shape_cast %161 : vector<1x32x96xf32> to vector<32x96xf32>
    %c1_64 = arith.constant 1 : index
    %c0_65 = arith.constant 0 : index
    %c96_66 = arith.constant 96 : index
    %163 = vector.load %arg3[%c1_64, %c0_65, %c96_66] : memref<2x96x256xf32, #tpu.memory_space<vmem>>, vector<1x32x32xf32>
    %164 = vector.shape_cast %163 : vector<1x32x32xf32> to vector<32x32xf32>
    %c1_67 = arith.constant 1 : index
    %c0_68 = arith.constant 0 : index
    %c128_69 = arith.constant 128 : index
    %165 = vector.load %arg3[%c1_67, %c0_68, %c128_69] : memref<2x96x256xf32, #tpu.memory_space<vmem>>, vector<1x32x64xf32>
    %166 = vector.shape_cast %165 : vector<1x32x64xf32> to vector<32x64xf32>
    %c1_70 = arith.constant 1 : index
    %c32_71 = arith.constant 32 : index
    %c0_72 = arith.constant 0 : index
    %167 = vector.load %arg3[%c1_70, %c32_71, %c0_72] : memref<2x96x256xf32, #tpu.memory_space<vmem>>, vector<1x64x32xf32>
    %168 = vector.shape_cast %167 : vector<1x64x32xf32> to vector<64x32xf32>
    %c1_73 = arith.constant 1 : index
    %c0_74 = arith.constant 0 : index
    %c0_75 = arith.constant 0 : index
    %169 = vector.load %arg4[%c1_73, %c0_74, %c0_75] : memref<2x8x128xf32, #tpu.memory_space<vmem>>, vector<1x1x96xf32>
    %170 = vector.shape_cast %169 : vector<1x1x96xf32> to vector<1x96xf32>
    %c1_76 = arith.constant 1 : index
    %c1_77 = arith.constant 1 : index
    %c0_78 = arith.constant 0 : index
    %171 = vector.load %arg4[%c1_76, %c1_77, %c0_78] : memref<2x8x128xf32, #tpu.memory_space<vmem>>, vector<1x1x32xf32>
    %172 = vector.shape_cast %171 : vector<1x1x32xf32> to vector<1x32xf32>
    %c1_79 = arith.constant 1 : index
    %c2_80 = arith.constant 2 : index
    %c0_81 = arith.constant 0 : index
    %173 = vector.load %arg4[%c1_79, %c2_80, %c0_81] : memref<2x8x128xf32, #tpu.memory_space<vmem>>, vector<1x1x32xf32>
    %174 = vector.shape_cast %173 : vector<1x1x32xf32> to vector<1x32xf32>
    %c1_82 = arith.constant 1 : index
    %c3_83 = arith.constant 3 : index
    %c0_84 = arith.constant 0 : index
    %175 = vector.load %arg4[%c1_82, %c3_83, %c0_84] : memref<2x8x128xf32, #tpu.memory_space<vmem>>, vector<1x1x32xf32>
    %176 = vector.shape_cast %175 : vector<1x1x32xf32> to vector<1x32xf32>
    %c1_85 = arith.constant 1 : index
    %c4_86 = arith.constant 4 : index
    %c0_87 = arith.constant 0 : index
    %177 = vector.load %arg4[%c1_85, %c4_86, %c0_87] : memref<2x8x128xf32, #tpu.memory_space<vmem>>, vector<1x1x64xf32>
    %178 = vector.shape_cast %177 : vector<1x1x64xf32> to vector<1x64xf32>
    %c1_88 = arith.constant 1 : index
    %c5_89 = arith.constant 5 : index
    %c0_90 = arith.constant 0 : index
    %179 = vector.load %arg4[%c1_88, %c5_89, %c0_90] : memref<2x8x128xf32, #tpu.memory_space<vmem>>, vector<1x1x32xf32>
    %180 = vector.shape_cast %179 : vector<1x1x32xf32> to vector<1x32xf32>
    %c1_91 = arith.constant 1 : index
    %c6_92 = arith.constant 6 : index
    %c0_93 = arith.constant 0 : index
    %181 = vector.load %arg4[%c1_91, %c6_92, %c0_93] : memref<2x8x128xf32, #tpu.memory_space<vmem>>, vector<1x1x32xf32>
    %182 = vector.shape_cast %181 : vector<1x1x32xf32> to vector<1x32xf32>
    %c1_94 = arith.constant 1 : index
    %c7_95 = arith.constant 7 : index
    %c0_96 = arith.constant 0 : index
    %183 = vector.load %arg4[%c1_94, %c7_95, %c0_96] : memref<2x8x128xf32, #tpu.memory_space<vmem>>, vector<1x1x32xf32>
    %184 = vector.shape_cast %183 : vector<1x1x32xf32> to vector<1x32xf32>
    %cst_97 = arith.constant dense<0.000000e+00> : vector<10x96xf32>
    %185 = tpu.matmul %160, %162, %cst_97 {dimension_numbers = #tpu.dot_dimension_numbers<[1], [0], [0], [1], [0, 0, 1, 1], [], []>} : vector<10x32xf32>, vector<32x96xf32>, vector<10x96xf32> -> vector<10x96xf32>
    %186 = vector.broadcast %170 : vector<1x96xf32> to vector<10x96xf32>
    %187 = arith.addf %185, %186 : vector<10x96xf32>
    %188 = vector.extract_strided_slice %187 {offsets = [0, 0], sizes = [10, 32], strides = [1, 1]} : vector<10x96xf32> to vector<10x32xf32>
    %cst_98 = arith.constant 0.353553385 : f32
    %189 = vector.broadcast %cst_98 : f32 to vector<10x32xf32>
    %190 = arith.mulf %188, %189 : vector<10x32xf32>
    %191 = vector.extract_strided_slice %187 {offsets = [0, 32], sizes = [10, 32], strides = [1, 1]} : vector<10x96xf32> to vector<10x32xf32>
    %192 = vector.extract_strided_slice %187 {offsets = [0, 64], sizes = [10, 32], strides = [1, 1]} : vector<10x96xf32> to vector<10x32xf32>
    %cst_99 = arith.constant dense<0.000000e+00> : vector<10x32xf32>
    %193 = tpu.matmul %37, %191, %cst_99 {dimension_numbers = #tpu.dot_dimension_numbers<[1], [0], [0], [1], [0, 0, 1, 1], [], []>} : vector<10x10xf32>, vector<10x32xf32>, vector<10x32xf32> -> vector<10x32xf32>
    %cst_100 = arith.constant dense<0.000000e+00> : vector<10x32xf32>
    %194 = tpu.matmul %37, %192, %cst_100 {dimension_numbers = #tpu.dot_dimension_numbers<[1], [0], [0], [1], [0, 0, 1, 1], [], []>} : vector<10x10xf32>, vector<10x32xf32>, vector<10x32xf32> -> vector<10x32xf32>
    %195 = arith.mulf %190, %191 : vector<10x32xf32>
    %cst_101 = arith.constant dense<0.000000e+00> : vector<10x4xf32>
    %196 = tpu.matmul %195, %12, %cst_101 {dimension_numbers = #tpu.dot_dimension_numbers<[1], [0], [0], [1], [0, 0, 1, 1], [], []>} : vector<10x32xf32>, vector<32x4xf32>, vector<10x4xf32> -> vector<10x4xf32>
    %197 = arith.mulf %190, %193 : vector<10x32xf32>
    %cst_102 = arith.constant dense<0.000000e+00> : vector<10x4xf32>
    %198 = tpu.matmul %197, %12, %cst_102 {dimension_numbers = #tpu.dot_dimension_numbers<[1], [0], [0], [1], [0, 0, 1, 1], [], []>} : vector<10x32xf32>, vector<32x4xf32>, vector<10x4xf32> -> vector<10x4xf32>
    %199 = arith.maximumf %196, %198 : vector<10x4xf32>
    %200 = arith.subf %196, %199 : vector<10x4xf32>
    %201 = math.exp %200 : vector<10x4xf32>
    %202 = arith.subf %198, %199 : vector<10x4xf32>
    %203 = math.exp %202 : vector<10x4xf32>
    %204 = arith.addf %201, %203 : vector<10x4xf32>
    %205 = tpu.reciprocal %204 {approx = true} : vector<10x4xf32> -> vector<10x4xf32>
    %206 = arith.mulf %201, %205 : vector<10x4xf32>
    %cst_103 = arith.constant dense<0.000000e+00> : vector<10x32xf32>
    %207 = tpu.matmul %206, %25, %cst_103 {dimension_numbers = #tpu.dot_dimension_numbers<[1], [0], [0], [1], [0, 0, 1, 1], [], []>} : vector<10x4xf32>, vector<4x32xf32>, vector<10x32xf32> -> vector<10x32xf32>
    %208 = arith.mulf %207, %192 : vector<10x32xf32>
    %209 = arith.mulf %203, %205 : vector<10x4xf32>
    %cst_104 = arith.constant dense<0.000000e+00> : vector<10x32xf32>
    %210 = tpu.matmul %209, %25, %cst_104 {dimension_numbers = #tpu.dot_dimension_numbers<[1], [0], [0], [1], [0, 0, 1, 1], [], []>} : vector<10x4xf32>, vector<4x32xf32>, vector<10x32xf32> -> vector<10x32xf32>
    %211 = arith.mulf %210, %194 : vector<10x32xf32>
    %212 = arith.addf %208, %211 : vector<10x32xf32>
    %cst_105 = arith.constant dense<0.000000e+00> : vector<10x32xf32>
    %213 = tpu.matmul %212, %164, %cst_105 {dimension_numbers = #tpu.dot_dimension_numbers<[1], [0], [0], [1], [0, 0, 1, 1], [], []>} : vector<10x32xf32>, vector<32x32xf32>, vector<10x32xf32> -> vector<10x32xf32>
    %214 = arith.addf %160, %213 : vector<10x32xf32>
    %215 = vector.broadcast %172 : vector<1x32xf32> to vector<10x32xf32>
    %216 = arith.addf %214, %215 : vector<10x32xf32>
    %cst_106 = arith.constant dense<0.000000e+00> : vector<10xf32>
    %217 = vector.multi_reduction <add>, %216, %cst_106 [1] : vector<10x32xf32> to vector<10xf32>
    %218 = vector.shape_cast %217 : vector<10xf32> to vector<10x1xf32>
    %cst_107 = arith.constant 3.200000e+01 : f32
    %219 = vector.broadcast %cst_107 : f32 to vector<10x1xf32>
    %220 = arith.divf %218, %219 : vector<10x1xf32>
    %221 = vector.broadcast %220 : vector<10x1xf32> to vector<10x32xf32>
    %222 = arith.subf %216, %221 : vector<10x32xf32>
    %223 = arith.mulf %222, %222 : vector<10x32xf32>
    %cst_108 = arith.constant dense<0.000000e+00> : vector<10xf32>
    %224 = vector.multi_reduction <add>, %223, %cst_108 [1] : vector<10x32xf32> to vector<10xf32>
    %225 = vector.shape_cast %224 : vector<10xf32> to vector<10x1xf32>
    %cst_109 = arith.constant 3.200000e+01 : f32
    %226 = vector.broadcast %cst_109 : f32 to vector<10x1xf32>
    %227 = arith.divf %225, %226 : vector<10x1xf32>
    %228 = vector.broadcast %220 : vector<10x1xf32> to vector<10x32xf32>
    %229 = arith.subf %216, %228 : vector<10x32xf32>
    %cst_110 = arith.constant 9.99999974E-6 : f32
    %230 = vector.broadcast %cst_110 : f32 to vector<10x1xf32>
    %231 = arith.addf %227, %230 : vector<10x1xf32>
    %232 = math.rsqrt %231 : vector<10x1xf32>
    %233 = vector.broadcast %232 : vector<10x1xf32> to vector<10x32xf32>
    %234 = arith.mulf %229, %233 : vector<10x32xf32>
    %235 = vector.broadcast %174 : vector<1x32xf32> to vector<10x32xf32>
    %236 = arith.mulf %234, %235 : vector<10x32xf32>
    %237 = vector.broadcast %176 : vector<1x32xf32> to vector<10x32xf32>
    %238 = arith.addf %236, %237 : vector<10x32xf32>
    %cst_111 = arith.constant dense<0.000000e+00> : vector<10x64xf32>
    %239 = tpu.matmul %238, %166, %cst_111 {dimension_numbers = #tpu.dot_dimension_numbers<[1], [0], [0], [1], [0, 0, 1, 1], [], []>} : vector<10x32xf32>, vector<32x64xf32>, vector<10x64xf32> -> vector<10x64xf32>
    %240 = vector.broadcast %178 : vector<1x64xf32> to vector<10x64xf32>
    %241 = arith.addf %239, %240 : vector<10x64xf32>
    %cst_112 = arith.constant 0.000000e+00 : f32
    %242 = vector.broadcast %cst_112 : f32 to vector<10x64xf32>
    %243 = arith.maximumf %241, %242 : vector<10x64xf32>
    %cst_113 = arith.constant dense<0.000000e+00> : vector<10x32xf32>
    %244 = tpu.matmul %243, %168, %cst_113 {dimension_numbers = #tpu.dot_dimension_numbers<[1], [0], [0], [1], [0, 0, 1, 1], [], []>} : vector<10x64xf32>, vector<64x32xf32>, vector<10x32xf32> -> vector<10x32xf32>
    %245 = arith.addf %238, %244 : vector<10x32xf32>
    %246 = vector.broadcast %180 : vector<1x32xf32> to vector<10x32xf32>
    %247 = arith.addf %245, %246 : vector<10x32xf32>
    %cst_114 = arith.constant dense<0.000000e+00> : vector<10xf32>
    %248 = vector.multi_reduction <add>, %247, %cst_114 [1] : vector<10x32xf32> to vector<10xf32>
    %249 = vector.shape_cast %248 : vector<10xf32> to vector<10x1xf32>
    %cst_115 = arith.constant 3.200000e+01 : f32
    %250 = vector.broadcast %cst_115 : f32 to vector<10x1xf32>
    %251 = arith.divf %249, %250 : vector<10x1xf32>
    %252 = vector.broadcast %251 : vector<10x1xf32> to vector<10x32xf32>
    %253 = arith.subf %247, %252 : vector<10x32xf32>
    %254 = arith.mulf %253, %253 : vector<10x32xf32>
    %cst_116 = arith.constant dense<0.000000e+00> : vector<10xf32>
    %255 = vector.multi_reduction <add>, %254, %cst_116 [1] : vector<10x32xf32> to vector<10xf32>
    %256 = vector.shape_cast %255 : vector<10xf32> to vector<10x1xf32>
    %cst_117 = arith.constant 3.200000e+01 : f32
    %257 = vector.broadcast %cst_117 : f32 to vector<10x1xf32>
    %258 = arith.divf %256, %257 : vector<10x1xf32>
    %259 = vector.broadcast %251 : vector<10x1xf32> to vector<10x32xf32>
    %260 = arith.subf %247, %259 : vector<10x32xf32>
    %cst_118 = arith.constant 9.99999974E-6 : f32
    %261 = vector.broadcast %cst_118 : f32 to vector<10x1xf32>
    %262 = arith.addf %258, %261 : vector<10x1xf32>
    %263 = math.rsqrt %262 : vector<10x1xf32>
    %264 = vector.broadcast %263 : vector<10x1xf32> to vector<10x32xf32>
    %265 = arith.mulf %260, %264 : vector<10x32xf32>
    %266 = vector.broadcast %182 : vector<1x32xf32> to vector<10x32xf32>
    %267 = arith.mulf %265, %266 : vector<10x32xf32>
    %268 = vector.broadcast %184 : vector<1x32xf32> to vector<10x32xf32>
    %269 = arith.addf %267, %268 : vector<10x32xf32>
    %cst_119 = arith.constant dense<0.000000e+00> : vector<8x32xf32>
    %270 = tpu.matmul %44, %269, %cst_119 {dimension_numbers = #tpu.dot_dimension_numbers<[1], [0], [0], [1], [0, 0, 1, 1], [], []>} : vector<8x10xf32>, vector<10x32xf32>, vector<8x32xf32> -> vector<8x32xf32>
    %cst_120 = arith.constant dense<0.000000e+00> : vector<8xf32>
    %271 = vector.multi_reduction <add>, %270, %cst_120 [1] : vector<8x32xf32> to vector<8xf32>
    %272 = vector.shape_cast %271 : vector<8xf32> to vector<8x1xf32>
    %cst_121 = arith.constant 3.200000e+01 : f32
    %273 = vector.broadcast %cst_121 : f32 to vector<8x1xf32>
    %274 = arith.divf %272, %273 : vector<8x1xf32>
    %275 = vector.broadcast %274 : vector<8x1xf32> to vector<8x32xf32>
    %276 = arith.subf %270, %275 : vector<8x32xf32>
    %277 = arith.mulf %276, %276 : vector<8x32xf32>
    %cst_122 = arith.constant dense<0.000000e+00> : vector<8xf32>
    %278 = vector.multi_reduction <add>, %277, %cst_122 [1] : vector<8x32xf32> to vector<8xf32>
    %279 = vector.shape_cast %278 : vector<8xf32> to vector<8x1xf32>
    %cst_123 = arith.constant 3.200000e+01 : f32
    %280 = vector.broadcast %cst_123 : f32 to vector<8x1xf32>
    %281 = arith.divf %279, %280 : vector<8x1xf32>
    %282 = vector.broadcast %274 : vector<8x1xf32> to vector<8x32xf32>
    %283 = arith.subf %270, %282 : vector<8x32xf32>
    %cst_124 = arith.constant 9.99999974E-6 : f32
    %284 = vector.broadcast %cst_124 : f32 to vector<8x1xf32>
    %285 = arith.addf %281, %284 : vector<8x1xf32>
    %286 = math.rsqrt %285 : vector<8x1xf32>
    %287 = vector.broadcast %286 : vector<8x1xf32> to vector<8x32xf32>
    %288 = arith.mulf %283, %287 : vector<8x32xf32>
    %289 = vector.broadcast %47 : vector<1x32xf32> to vector<8x32xf32>
    %290 = arith.mulf %288, %289 : vector<8x32xf32>
    %291 = vector.broadcast %48 : vector<1x32xf32> to vector<8x32xf32>
    %292 = arith.addf %290, %291 : vector<8x32xf32>
    %cst_125 = arith.constant dense<0.000000e+00> : vector<8x128xf32>
    %293 = tpu.matmul %292, %46, %cst_125 {dimension_numbers = #tpu.dot_dimension_numbers<[1], [0], [0], [1], [0, 0, 1, 1], [], []>} : vector<8x32xf32>, vector<32x128xf32>, vector<8x128xf32> -> vector<8x128xf32>
    %294 = vector.broadcast %49 : vector<1x128xf32> to vector<8x128xf32>
    %295 = arith.addf %293, %294 : vector<8x128xf32>
    %c0_126 = arith.constant 0 : index
    %c0_127 = arith.constant 0 : index
    %296 = vector.load %arg5[%c0_126, %c0_127] : memref<8x128xf32, #tpu.memory_space<vmem>>, vector<8x128xf32>
    tpu.vector_store %arg5[%c0_126, %c0_127], %295 {strides = array<i32>} : memref<8x128xf32, #tpu.memory_space<vmem>>, vector<8x128xf32>,
    return
  }
  func.func @transform_0(%arg0: i32) -> (i32, i32) {
    %c0_i32 = arith.constant 0 : i32
    %c0_i32_0 = arith.constant 0 : i32
    %c0_i32_1 = arith.constant 0 : i32
    return %c0_i32, %c0_i32_0 : i32, i32
  }
  func.func @transform_1(%arg0: i32) -> (i32, i32) {
    %c0_i32 = arith.constant 0 : i32
    %c0_i32_0 = arith.constant 0 : i32
    %c0_i32_1 = arith.constant 0 : i32
    return %c0_i32, %c0_i32_0 : i32, i32
  }
  func.func @transform_2(%arg0: i32) -> (i32, i32, i32) {
    %c0_i32 = arith.constant 0 : i32
    %c0_i32_0 = arith.constant 0 : i32
    %c0_i32_1 = arith.constant 0 : i32
    %c0_i32_2 = arith.constant 0 : i32
    return %c0_i32, %c0_i32_0, %c0_i32_1 : i32, i32, i32
  }
  func.func @transform_3(%arg0: i32) -> (i32, i32, i32) {
    %c0_i32 = arith.constant 0 : i32
    %c0_i32_0 = arith.constant 0 : i32
    %c0_i32_1 = arith.constant 0 : i32
    %c0_i32_2 = arith.constant 0 : i32
    return %c0_i32, %c0_i32_0, %c0_i32_1 : i32, i32, i32
  }
  func.func @transform_4(%arg0: i32) -> (i32, i32) {
    %c0_i32 = arith.constant 0 : i32
    %c0_i32_0 = arith.constant 0 : i32
    %c0_i32_1 = arith.constant 0 : i32
    return %c0_i32, %c0_i32_0 : i32, i32
  }
}

</mosaic_0001>

<bundles_post_ra>
// kernel: vit_forward_impl.1
= control target key start
LH: loop header
LB: loop body
LE: loop exit
PB: predicated region body
PF: predicated region fallthrough
CT: control target
= control target key end

     0   :  { %vm312_vm0 = vcmask 261120   ;;  %s3291_s28 = smov 64   ;;  %s3292_s29 = smov 96   ;;  %s3930_s1 = inlined_call_operand.vmem [shape: f32[424,128], index: 1, kind: input, shape index: {}]   ;;  %s3931_s0 = inlined_call_operand.vmem [shape: f32[10,384], index: 0, kind: input, shape index: {}]   ;;  %s3932_s2 = inlined_call_operand.vmem [shape: f32[2,96,256], index: 2, kind: input, shape index: {}]   ;;  %s3933_s3 = inlined_call_operand.vmem [shape: f32[2,8,128], index: 3, kind: input, shape index: {}]   ;;  %s3934_s4 = inlined_call_operand.vmem [shape: f32[8,128], index: 4, kind: output, shape index: {}]  }
   0x1   :  { %v89_v0 = vld [vmem:[%s3930_s1 + $0x80] sm:$0xff]  ;;  %v90_v1 = vld [vmem:[%s3930_s1 + $0x88] sm:$0xff]  ;;  %v91_v9 = vld [vmem:[%s3930_s1 + $0x90] sm:$0xff]  ;;  %s3294_s30 = smov 32  }
   0x2   :  { %v73_v2 = vld [vmem:[%s3930_s1] sm:$0xff]  ;;  %v3009_v3 = vpack.c.bf16 %v90_v1, %v89_v0  ;;  %v74_v4 = vld [vmem:[%s3930_s1 + $0x8] sm:$0xff]  ;;  %v92_v10 = vld [vmem:[%s3930_s1 + $0x98] sm:$0xff] }
   0x3   :  { %v105_v5 = vld [vmem:[%s3930_s1 + $0x100] sm:$0xff]  ;;  %v106_v6 = vld [vmem:[%s3930_s1 + $0x108] sm:$0xff]  ;;  %v3011_v7 = vpack.c.bf16 %v74_v4, %v73_v2  ;;  %v75_v11 = vld [vmem:[%s3930_s1 + $0x10] sm:$0xff]  ;;  %v3013_v12 = vpack.c.bf16 %v92_v10, %v91_v9 }
   0x4   :  { %v3041_v8 = vpack.c.bf16 %v106_v6, %v105_v5  ;;  %3010 = vmatprep.subr.bf16.mxu0 %v3009_v3  ;;  %v76_v13 = vld [vmem:[%s3930_s1 + $0x18] sm:$0xff]  ;;  %v107_v14 = vld [vmem:[%s3930_s1 + $0x110] sm:$0xff]  ;;  %v93_v18 = vld [vmem:[%s3930_s1 + $0xa0] sm:$0xff] }
   0x5   :  { %v108_v15 = vld [vmem:[%s3930_s1 + $0x118] sm:$0xff]  ;;  %3012 = vmatpush3.bf16.msra.mxu0 %v3011_v7  ;;  %v3015_v16 = vpack.c.bf16 %v76_v13, %v75_v11  ;;  %v94_v19 = vld [vmem:[%s3930_s1 + $0xa8] sm:$0xff]  ;;  %v77_v20 = vld [vmem:[%s3930_s1 + $0x20] sm:$0xff] }
   0x6   :  { %3042 = vmatprep.subr.bf16.mxu1 %v3041_v8  ;;  %v3045_v17 = vpack.c.bf16 %v108_v15, %v107_v14  ;;  %3014 = vmatprep.subr.bf16.mxu0 %v3013_v12  ;;  %v3017_v21 = vpack.c.bf16 %v94_v19, %v93_v18  ;;  %v78_v22 = vld [vmem:[%s3930_s1 + $0x28] sm:$0xff]  ;;  %v109_v23 = vld [vmem:[%s3930_s1 + $0x120] sm:$0xff]  ;;  %v95_v26 = vld [vmem:[%s3930_s1 + $0xb0] sm:$0xff] }
   0x7   :  { %3044 = vmatpush3.bf16.msra.mxu1 %v3041_v8  ;;  %v110_v24 = vld [vmem:[%s3930_s1 + $0x128] sm:$0xff]  ;;  %v96_v27 = vld [vmem:[%s3930_s1 + $0xb8] sm:$0xff]  ;;  %v111_v28 = vld [vmem:[%s3930_s1 + $0x130] sm:$0xff]  ;;  %v3019_v30 = vpack.c.bf16 %v78_v22, %v77_v20 }
   0x8   :  { %3046 = vmatprep.subr.bf16.mxu1 %v3045_v17  ;;  %v3049_v25 = vpack.c.bf16 %v110_v24, %v109_v23  ;;  %v112_v29 = vld [vmem:[%s3930_s1 + $0x138] sm:$0xff]  ;;  %v3021_v31 = vpack.c.bf16 %v96_v27, %v95_v26  ;;  %v79_v32 = vld [vmem:[%s3930_s1 + $0x30] sm:$0xff]  ;;  %v97_v35 = vld [vmem:[%s3930_s1 + $0xc0] sm:$0xff] }
   0x9   :  { %3016 = vmatpush3.bf16.msra.mxu0 %v3015_v16  ;;  %v80_v33 = vld [vmem:[%s3930_s1 + $0x38] sm:$0xff]  ;;  %v3053_v34 = vpack.c.bf16 %v112_v29, %v111_v28  ;;  %v98_v36 = vld [vmem:[%s3930_s1 + $0xc8] sm:$0xff]  ;;  %v113_v37 = vld [vmem:[%s3930_s1 + $0x140] sm:$0xff] }
   0xa   :  { %3018 = vmatprep.subr.bf16.mxu0 %v3017_v21  ;;  %v114_v38 = vld [vmem:[%s3930_s1 + $0x148] sm:$0xff]  ;;  %v3023_v39 = vpack.c.bf16 %v80_v33, %v79_v32  ;;  %v3025_v40 = vpack.c.bf16 %v98_v36, %v97_v35  ;;  %v81_v41 = vld [vmem:[%s3930_s1 + $0x40] sm:$0xff]  ;;  %v99_v44 = vld [vmem:[%s3930_s1 + $0xd0] sm:$0xff] }
   0xb   :  { %3048 = vmatpush3.bf16.msra.mxu1 %v3045_v17  ;;  %v82_v42 = vld [vmem:[%s3930_s1 + $0x48] sm:$0xff]  ;;  %v3057_v43 = vpack.c.bf16 %v114_v38, %v113_v37  ;;  %v100_v45 = vld [vmem:[%s3930_s1 + $0xd8] sm:$0xff]  ;;  %v115_v46 = vld [vmem:[%s3930_s1 + $0x150] sm:$0xff]  ;;  %v3289_v38 = vmov 1.0|1.0  }
   0xc   :  { %3050 = vmatprep.subr.bf16.mxu1 %v3049_v25  ;;  %v116_v47 = vld [vmem:[%s3930_s1 + $0x158] sm:$0xff]  ;;  %v3027_v48 = vpack.c.bf16 %v82_v42, %v81_v41  ;;  %v129_v49 = vld [vmem:[%s3931_s0 + $0x8] sm:$0xff]  ;;  %v130_v50 = vld [vmem:[%s3931_s0 + $0x10] sm:$0xff]  ;;  %v3029_v51 = vpack.c.bf16 %v100_v45, %v99_v44 }
   0xd   :  { %3020 = vmatpush3.bf16.msra.mxu0 %v3019_v30  ;;  %v83_v52 = vld [vmem:[%s3930_s1 + $0x50] sm:$0xff]  ;;  %v84_v53 = vld [vmem:[%s3930_s1 + $0x58] sm:$0xff]  ;;  %v3061_v54 = vpack.c.bf16 %v116_v47, %v115_v46  ;;  %v101_v55 = vld [vmem:[%s3930_s1 + $0xe0] sm:$0xff]  ;;  %198 = vmatprep.mubr.f32.mxu0 %v129_v49  ;;  %v17_v30 = vlaneseq  ;;  %v3290_v46 = vmov 0.0  }
   0xe   :  { %3022 = vmatprep.subr.bf16.mxu0 %v3021_v31  ;;  %v102_v56 = vld [vmem:[%s3930_s1 + $0xe8] sm:$0xff]  ;;  %v117_v57 = vld [vmem:[%s3930_s1 + $0x160] sm:$0xff]  ;;  %2792 = vmatprep.mubr.f32.mxu1 %v130_v50  ;;  %v3031_v59 = vpack.c.bf16 %v84_v53, %v83_v52  ;;  %v103_v0 = vld [vmem:[%s3930_s1 + $0xf0] sm:$0xff] }
   0xf   :  { %3052 = vmatpush3.bf16.msra.mxu1 %v3049_v25  ;;  %v118_v58 = vld [vmem:[%s3930_s1 + $0x168] sm:$0xff]  ;;  %v3033_v60 = vpack.c.bf16 %v102_v56, %v101_v55  ;;  %v85_v61 = vld [vmem:[%s3930_s1 + $0x60] sm:$0xff]  ;;  %v104_v1 = vld [vmem:[%s3930_s1 + $0xf8] sm:$0xff]  ;;  %v3516_v31 = vshrl.u32 %v17_v30, 7  ;;  %v3518_v32 = vand.u32 127, %v17_v30 }
  0x10   :  { %3054 = vmatprep.subr.bf16.mxu1 %v3053_v34  ;;  %v86_v62 = vld [vmem:[%s3930_s1 + $0x68] sm:$0xff]  ;;  %v3065_v63 = vpack.c.bf16 %v118_v58, %v117_v57  ;;  %v119_v2 = vld [vmem:[%s3930_s1 + $0x170] sm:$0xff]  ;;  %v120_v3 = vld [vmem:[%s3930_s1 + $0x178] sm:$0xff]  ;;  %v3037_v5 = vpack.c.bf16 %v104_v1, %v103_v0 }
  0x11   :  { %3024 = vmatpush3.bf16.msra.mxu0 %v3023_v39  ;;  %v3035_v4 = vpack.c.bf16 %v86_v62, %v85_v61  ;;  %v87_v6 = vld [vmem:[%s3930_s1 + $0x70] sm:$0xff]  ;;  %v88_v7 = vld [vmem:[%s3930_s1 + $0x78] sm:$0xff]  ;;  %v3069_v8 = vpack.c.bf16 %v120_v3, %v119_v2  ;;  %v128_v10 = vld [vmem:[%s3931_s0] sm:$0xff]  ;;  %v19_v33 = vadd.s32 8, %v3516_v31  ;;  %v29_v35 = vadd.s32 1, %v3518_v32 }
  0x12   :  { %3026 = vmatprep.subr.bf16.mxu0 %v3025_v40  ;;  %v3039_v9 = vpack.c.bf16 %v88_v7, %v87_v6  ;;  %v133_v11 = vld [vmem:[%s3931_s0 + $0x28] sm:$0x3]  ;;  %v132_v12 = vld [vmem:[%s3931_s0 + $0x20] sm:$0x3]  ;;  %v131_v13 = vld [vmem:[%s3931_s0 + $0x18] sm:$0x3] }
  0x13   :  { %3056 = vmatpush3.bf16.msra.mxu1 %v3053_v34  ;;  %v3487_v14 = vld [vmem:[%s3932_s2] sm:$0xff]  ;;  %v3492_v15 = vld [vmem:[%s3932_s2 + $0x10] sm:$0xff]  ;;  %v24_v34 = vmul.u32 8, %v3518_v32  ;;  %v30_v36 = vmul.u32 8, %v29_v35  ;;  %v20_v39 = vadd.s32 16, %v3516_v31  ;;  %v21_v40 = vadd.s32 24, %v3516_v31 }
  0x14   :  { %3058 = vmatprep.subr.bf16.mxu1 %v3057_v43  ;;  %v3073_v16 = vpack.c.bf16 %v3492_v15, %v3487_v14  ;;  %v3499_v17 = vld [vmem:[%s3932_s2 + $0x20] sm:$0xff]  ;;  %v3504_v18 = vld [vmem:[%s3932_s2 + $0x30] sm:$0xff]  ;;  %v55_v42 = vadd.s32 5, %v3516_v31  ;;  %v56_v52 = vadd.s32 5, %v19_v33 }
  0x15   :  { %3028 = vmatpush3.bf16.msra.mxu0 %v3027_v48  ;;  %v3077_v19 = vpack.c.bf16 %v3504_v18, %v3499_v17  ;;  %vm25_vm1 = vcmp.ge.s32.totalorder %v3516_v31, %v24_v34  ;;  %vm26_vm2 = vcmp.ge.s32.totalorder %v19_v33, %v24_v34  ;;  %vm31_vm3 = vcmp.lt.s32.totalorder %v3516_v31, %v30_v36  ;;  %v2478_v45 = vld [vmem:[%s3933_s3] ss:$0 sm:$0xff] }
  0x16   :  { %3030 = vmatprep.subr.bf16.mxu0 %v3029_v51  ;;  %vm32_vm4 = vcmp.lt.s32.totalorder %v19_v33, %v30_v36  ;;  %vm35_vm5 = vmand %vm25_vm1, %vm31_vm3  ;;  %vm27_vm8 = vcmp.ge.s32.totalorder %v20_v39, %v24_v34  ;;  %vm28_vm9 = vcmp.ge.s32.totalorder %v21_v40, %v24_v34  ;;  %vm33_vm10 = vcmp.lt.s32.totalorder %v20_v39, %v30_v36 }
  0x17   :  { %3060 = vmatpush3.bf16.msra.mxu1 %v3057_v43  ;;  %vm36_vm6 = vmand %vm26_vm2, %vm32_vm4  ;;  %vm34_vm11 = vcmp.lt.s32.totalorder %v21_v40, %v30_v36  ;;  %v2473_v43 = vadd.s32 4294967286, %v55_v42  ;;  %vm57_vm15 = vcmp.ge.s32.totalorder %v55_v42, 10  ;;  %vm403_vm2 = vcmask 80896  }
  0x18   :  { %3062 = vmatprep.subr.bf16.mxu1 %v3061_v54  ;;  %vm3525_vm7 = vmpackc.low %vm36_vm6, %vm35_vm5  ;;  %vm410_vm3 = vcmask 1041408   ;;  %v2474_v57 = vadd.s32 4294967286, %v56_v52  ;;  %vm3293_vm4 = vmmov 1  }
  0x19   :  { %3032 = vmatpush3.bf16.msra.mxu0 %v3031_v59  ;;  %vm37_vm12 = vmand %vm27_vm8, %vm33_vm10  ;;  %v61_v44 = vsel %vm57_vm15, %v2473_v43, %v55_v42  ;;  %vm764_vm10 = vcmask 1043456   ;;  %vm1165_vm15 = vcmask 523264  }
  0x1a   :  { %3034 = vmatprep.subr.bf16.mxu0 %v3033_v60  ;;  %vm38_vm13 = vmand %vm28_vm9, %vm34_vm11  ;;  %vm63_vm1 = vcmp.eq.s32.totalorder %v3518_v32, %v61_v44  ;;  %vm64_vm6 = vcmp.eq.s32.totalorder %v3518_v32, %v2474_v57 }
  0x1b   :  { %3064 = vmatpush3.bf16.msra.mxu1 %v3061_v54  ;;  %vm3537_vm14 = vmpackc.low %vm38_vm13, %vm37_vm12  ;;  %v3553_v47 = vsel %vm63_vm1, 1.0, %v3290_v46  ;;  %v3579_v1 = vsel %vm64_vm6, 1.0, %v3290_v46  ;;  %vm757_vm12 = vcmask 31744   ;;  %vm1041_vm13 = vcmask 254976  }
  0x1c   :  { %3066 = vmatprep.subr.bf16.mxu1 %v3065_v63  ;;  %vm3566_vm5 = vmpackc.low %vm410_vm3, %vm3293_vm4 }
  0x1d   :  { %3036 = vmatpush3.bf16.msra.mxu0 %v3035_v4 }
  0x1e   :  { %3038 = vmatprep.subr.bf16.mxu0 %v3037_v5 }
  0x1f   :  { %3068 = vmatpush3.bf16.msra.mxu1 %v3065_v63 }
  0x20   :  { %3070 = vmatprep.subr.bf16.mxu1 %v3069_v8 }
  0x21   :  { %3040 = vmatpush3.bf16.msra.mxu0 %v3039_v9 }
  0x22   :  { %3074 = vmatprep.subr.bf16.mxu0 %v3073_v16 }
  0x23   :  { %3072 = vmatpush3.bf16.msra.mxu1 %v3069_v8 }
  0x24   :  { %199 = vmatmul.mubr.f32.vlgmr.msra.gmra.mrb[0].mxu0 %v128_v10  ;;  %v47_v10 = vmul.u32 8, %v3516_v31 }
  0x25   :  { %203 = vmatprep.mubr.f32.mxu0 %v132_v12  ;;  %3076 = vmatpush3.bf16.msra.mxu0 %v3073_v16  ;;  %v3227_v16 = vpack.i.bf16 %v3492_v15, %v3487_v14 }
  0x26   :  { %2793 = vmatmul.mubr.f32.vlgmr.msra.gmra.mrb[0].mxu1 %v133_v11  ;;  %3078 = vmatprep.subr.bf16.mxu0 %v3077_v19  ;;  %v49_v11 = vadd.s32 1, %v3516_v31  ;;  %vm48_vm8 = vcmp.ge.s32.totalorder %v3518_v32, %v47_v10  ;;  %v2507_v10 = vld [vmem:[%s3933_s3 + $0x1] ss:$0 sm:$0xff] }
  0x27   :  { %2810 = vmatprep.mubr.msk.f32.mxu1 %vm403_vm2, %v3553_v47 }
  0x28   :  { %204 = vmatmul.mubr.f32.gmra.mrb[2].mxu0 %v131_v13  ;;  %v50_v12 = vmul.u32 8, %v49_v11 }
  0x29   :  { %3080 = vmatpush3.bf16.msra.mxu0 %v3077_v19  ;;  %v3232_v19 = vpack.i.bf16 %v3504_v18, %v3499_v17 }
  0x2a   :  { %3094 = vmatprep.subr.msk.bf16.mxu0 %vm3525_vm7, %v3289_v38  ;;  %vm51_vm9 = vcmp.lt.s32.totalorder %v3518_v32, %v50_v12 }
  0x2b   :  { %vm52_vm11 = vmand %vm48_vm8, %vm51_vm9 }
  0x2c   :  { %v3614_v13 = vsel %vm52_vm11, 1.0, %v3290_v46 }
  0xf7   :  { %v2620_v20 = vpop.f32.mrb[0].mxu0 }
  0xf8   :  { %v2621_v21 = vpop.f32.mrb[1].mxu0 }
  0xf9   :  { %v2794_v22 = vpop.f32.mrb[0].mxu1  ;;  %v2622_v23 = vadd.f32 %v2621_v21, %v2620_v20 }
  0xfa   :  { %v275_v24 = vpop.f32.mrb[1].mxu1 }
  0xfb   :  { %v3508_v25 = vadd.f32 %v2622_v23, %v275_v24  ;;  %v2623_v26 = vpop.f32.mrb[2].mxu0 }
  0xfc   :  { %v2624_v27 = vpop.f32.mrb[3].mxu0 }
  0xfd   :  { %v2625_v28 = vadd.f32 %v2624_v27, %v2623_v26  ;;  %2803 = vmatprep.mubr.msk.f32.mxu0 %vm312_vm0, %v3508_v25 }
  0xff   :  { %v3512_v29 = vadd.f32 %v2794_v22, %v2625_v28 }
 0x101   :  { %2804 = vmatmul.mubr.msk.f32.vlgmr.msra.gmra.mrb[4].mxu0 %vm312_vm0, %v3512_v29 }
 0x102   :  { %3096 = vmatpush3.bf16.msk.msra.mxu0 %vm3525_vm7, %v3289_v38 }
 0x103   :  { %3098 = vmatprep.subr.msk.bf16.mxu0 %vm3537_vm14, %v3289_v38 }
 0x106   :  { %3100 = vmatpush3.bf16.msk.msra.mxu0 %vm3537_vm14, %v3289_v38 }
 0x107   :  { %2842 = vmatprep.subr.msk.mxu0 %vm764_vm10, %v3614_v13 }
 0x1d4   :  { %v2805_v48 = vpop.f32.mrb[4].mxu0 }
 0x1d5   :  { %v385_v49 = vpop.f32.mrb[5].mxu0  ;;  %v391_v51 = vadd.f32 %v2805_v48, %v2478_v45 }
 0x1d6   :  { %v386_v50 = vadd.f32 %v2478_v45, %v385_v49 }
 0x1d7   :  { %v395_v58 = vmul.f32 0.35355338, %v391_v51 }
 0x1d8   :  { %488 = vrot.lane.b32.xlu1 %v386_v50, %s3291_s28  ;;  %398 = vrot.lane.b32.xlu0 %v386_v50, %s3292_s29  ;;  %v394_v53 = vmul.f32 0.35355338, %v386_v50 }
 0x1dc   :  { %490 = vrot.lane.b32.xlu1 %v391_v51, %s3291_s28  ;;  %400 = vrot.lane.b32.xlu0 %v391_v51, %s3292_s29 }
 0x1e0   :  { %3228 = vrot.lane.b32.xlu0 %v3227_v16, %s3294_s30  ;;  %3233 = vrot.lane.b32.xlu1 %v3232_v19, %s3294_s30 }
 0x24a   :  { %v3561_v54 = vpop.permute.xlu1 %488  ;;  %v399_v55 = vpop.permute.xlu0 %398 }
 0x24b   :  { %v571_v56 = vmul.f32 %v399_v55, %v394_v53 }
 0x24d   :  { %2828 = vmatprep.mubr.msk.f32.mxu0 %vm312_vm0, %v571_v56 }
 0x24e   :  { %v3564_v59 = vpop.permute.xlu1 %490  ;;  %v401_v60 = vpop.permute.xlu0 %400 }
 0x24f   :  { %v3081_v62 = vpack.c.bf16 %v401_v60, %v399_v55  ;;  %v572_v63 = vmul.f32 %v401_v60, %v395_v58  ;;  %v3087_v0 = vpack.c.bf16 %v3564_v59, %v3561_v54 }
 0x251   :  { %3083 = vmatprep.subr.msk.bf16.mxu1 %vm3566_vm5, %v3081_v62  ;;  %2829 = vmatmul.mubr.msk.f32.vlgmr.msra.gmra.mrb[6].mxu0 %vm312_vm0, %v572_v63 }
 0x252   :  { %3086 = vmatpush3.bf16.msk.msra.mxu1 %vm3566_vm5, %v3081_v62  ;;  %2843 = vmatpush3.msk.msra.mxu0 %vm764_vm10, %v3614_v13  ;;  %v3229_v40 = vpop.permute.xlu0 %3228  ;;  %v3234_v45 = vpop.permute.xlu1 %3233 }
 0x253   :  { %3089 = vmatprep.subr.msk.bf16.mxu1 %vm3566_vm5, %v3087_v0  ;;  %v3231_v42 = vunpack.i.h.bf16 %v3229_v40  ;;  %v3230_v43 = vunpack.i.l.bf16 %v3229_v40  ;;  %v3236_v49 = vunpack.i.h.bf16 %v3234_v45  ;;  %v3235_v50 = vunpack.i.l.bf16 %v3234_v45 }
 0x255   :  { %2811 = vmatmul.mubr.msk.f32.vlgmr.msra.gmra.mrb[2].mxu1 %vm403_vm2, %v3579_v1  ;;  %v3109_v44 = vpack.c.bf16 %v3231_v42, %v3230_v43  ;;  %v3113_v57 = vpack.c.bf16 %v3236_v49, %v3235_v50  ;;  %v296_v42 = vld [vmem:[%s3932_s2 + $0x80] sm:$0xff]  ;;  %v297_v43 = vld [vmem:[%s3932_s2 + $0x90] sm:$0xff] }
 0x256   :  { %3092 = vmatpush3.bf16.msk.msra.mxu1 %vm3566_vm5, %v3087_v0  ;;  %2817 = vmatprep.mubr.msk.f32.mxu1 %vm403_vm2, %v3553_v47 }
 0x257   :  { %3102 = vmatprep.subr.msk.bf16.mxu1 %vm3525_vm7, %v3289_v38  ;;  %3110 = vmatprep.subr.bf16.mxu0 %v3109_v44 }
 0x259   :  { %2818 = vmatmul.mubr.msk.f32.vlgmr.msra.gmra.mrb[4].mxu1 %vm403_vm2, %v3579_v1 }
 0x25a   :  { %3104 = vmatpush3.bf16.msk.msra.mxu1 %vm3525_vm7, %v3289_v38 }
 0x25b   :  { %3106 = vmatprep.subr.msk.bf16.mxu1 %vm3537_vm14, %v3289_v38 }
 0x25e   :  { %3108 = vmatpush3.bf16.msk.msra.mxu1 %vm3537_vm14, %v3289_v38 }
 0x25f   :  { %2847 = vmatprep.subr.msk.mxu1 %vm764_vm10, %v3614_v13 }
 0x324   :  { %v2830_v2 = vpop.f32.mrb[6].mxu0 }
 0x325   :  { %v645_v3 = vpop.f32.mrb[7].mxu0 }
 0x328   :  { %v2812_v4 = vpop.f32.mrb[2].mxu1 }
 0x329   :  { %v479_v5 = vpop.f32.mrb[3].mxu1  ;;  %v655_v7 = vmul.f32 %v2812_v4, %v395_v58 }
 0x32a   :  { %v654_v6 = vmul.f32 %v479_v5, %v394_v53 }
 0x32c   :  { %2839 = vmatprep.mubr.msk.f32.mxu1 %vm312_vm0, %v654_v6  ;;  %v3604_v8 = vpop.f32.mrb[4].mxu1 }
 0x32d   :  { %2840 = vmatmul.mubr.msk.f32.vlgmr.msra.gmra.mrb[6].mxu1 %vm312_vm0, %v655_v7  ;;  %v3607_v9 = vpop.f32.mrb[5].mxu1 }
 0x32e   :  { %2848 = vmatpush3.msk.msra.mxu1 %vm764_vm10, %v3614_v13 }
 0x400   :  { %v2841_v20 = vpop.f32.mrb[6].mxu1 }
 0x401   :  { %v738_v21 = vmax.f32 %v2830_v2, %v2841_v20  ;;  %v728_v22 = vpop.f32.mrb[7].mxu1 }
 0x402   :  { %v737_v23 = vmax.f32 %v645_v3, %v728_v22 }
 0x403   :  { %v740_v24 = vsub.f32 %v2830_v2, %v738_v21  ;;  %v746_v26 = vsub.f32 %v2841_v20, %v738_v21 }
 0x404   :  { %v739_v27 = vsub.f32 %v645_v3, %v737_v23  ;;  %v745_v28 = vsub.f32 %v728_v22, %v737_v23 }
 0x405   :  { %v743_v30 = vmul.f32 1.442695, %v740_v24  ;;  %v749_v33 = vmul.f32 1.442695, %v746_v26 }
 0x406   :  { %v741_v34 = vmul.f32 1.442695, %v739_v27  ;;  %v747_v14 = vmul.f32 1.442695, %v745_v28  ;;  %v288_v28 = vld [vmem:[%s3932_s2 + $0x8] sm:$0xff] }
 0x407   :  { %3247 = vpow2.f32 %v743_v30  ;;  %v289_v30 = vld [vmem:[%s3932_s2 + $0x18] sm:$0xff] }
 0x408   :  { %3249 = vpow2.f32 %v749_v33  ;;  %v3117_v33 = vpack.c.bf16 %v289_v30, %v288_v28 }
 0x409   :  { %3251 = vpow2.f32 %v741_v34  ;;  %v290_v34 = vld [vmem:[%s3932_s2 + $0x28] sm:$0xff] }
 0x40a   :  { %3253 = vpow2.f32 %v747_v14  ;;  %3118 = vmatprep.subr.bf16.mxu1 %v3117_v33  ;;  %v291_v14 = vld [vmem:[%s3932_s2 + $0x38] sm:$0xff] }
 0x411   :  { %v3248_v15 = vpop.eup %3247 }
 0x412   :  { %v3250_v17 = vpop.eup %3249 }
 0x413   :  { %v3252_v18 = vpop.eup %3251  ;;  %v752_v35 = vadd.f32 %v3250_v17, %v3248_v15 }
 0x414   :  { %v3254_v36 = vpop.eup %3253 }
 0x415   :  { %3255 = vrcp.f32 %v752_v35  ;;  %v751_v39 = vadd.f32 %v3254_v36, %v3252_v18  ;;  %v294_v35 = vld [vmem:[%s3932_s2 + $0x60] sm:$0xff] }
 0x417   :  { %3257 = vrcp.f32 %v751_v39  ;;  %v295_v39 = vld [vmem:[%s3932_s2 + $0x70] sm:$0xff] }
 0x418   :  { %v3129_v40 = vpack.c.bf16 %v295_v39, %v294_v35  ;;  %v3739_v39 = vld [vmem:[%s3932_s2 + $0xf0] sm:$0xff] }
 0x41f   :  { %v3256_v48 = vpop.eup %3255 }
 0x420   :  { %v756_v51 = vmul.f32 %v3256_v48, %v3248_v15  ;;  %v847_v52 = vmul.f32 %v3256_v48, %v3250_v17  ;;  %v3121_v15 = vpack.c.bf16 %v291_v14, %v290_v34  ;;  %v292_v17 = vld [vmem:[%s3932_s2 + $0x40] sm:$0xff] }
 0x421   :  { %v3258_v53 = vpop.eup %3257 }
 0x422   :  { %v755_v55 = vmul.f32 %v3258_v53, %v3252_v18  ;;  %v846_v56 = vmul.f32 %v3258_v53, %v3254_v36  ;;  %v293_v18 = vld [vmem:[%s3932_s2 + $0x50] sm:$0xff] }
 0x423   :  { %v3125_v36 = vpack.c.bf16 %v293_v18, %v292_v17  ;;  %v3722_v17 = vld [vmem:[%s3932_s2 + $0xc0] sm:$0xff]  ;;  %v3727_v18 = vld [vmem:[%s3932_s2 + $0xd0] sm:$0xff] }
 0x424   :  { %2844 = vmatprep.mubr.msk.f32.mxu0 %vm757_vm12, %v755_v55  ;;  %2849 = vmatprep.mubr.msk.f32.mxu1 %vm757_vm12, %v846_v56  ;;  %v2508_v55 = vld [vmem:[%s3933_s3 + $0x2] ss:$0 sm:$0xff]  ;;  %v3141_v35 = vpack.c.bf16 %v3727_v18, %v3722_v17 }
 0x425   :  { %2845 = vmatmul.mubr.msk.f32.vlgmr.msra.gmra.mrb[8].mxu0 %vm757_vm12, %v756_v51  ;;  %2850 = vmatmul.mubr.msk.f32.vlgmr.msra.gmra.mrb[8].mxu1 %vm757_vm12, %v847_v52 }
 0x426   :  { %3112 = vmatpush3.bf16.msra.mxu0 %v3109_v44  ;;  %3120 = vmatpush3.bf16.msra.mxu1 %v3117_v33  ;;  %v3133_v44 = vpack.c.bf16 %v297_v43, %v296_v42 }
 0x427   :  { %3114 = vmatprep.subr.bf16.mxu0 %v3113_v57  ;;  %3122 = vmatprep.subr.bf16.mxu1 %v3121_v15 }
 0x42a   :  { %3116 = vmatpush3.bf16.msra.mxu0 %v3113_v57  ;;  %3124 = vmatpush3.bf16.msra.mxu1 %v3121_v15  ;;  %v2509_v57 = vld [vmem:[%s3933_s3 + $0x3] ss:$0 sm:$0xff] }
 0x42b   :  { %3126 = vmatprep.subr.bf16.mxu0 %v3125_v36  ;;  %3142 = vmatprep.subr.bf16.mxu1 %v3141_v35 }
 0x4f8   :  { %v2846_v58 = vpop.f32.mrb[8].mxu0  ;;  %v2851_v60 = vpop.f32.mrb[8].mxu1 }
 0x4f9   :  { %v845_v62 = vmul.f32 %v2846_v58, %v3564_v59  ;;  %v930_v63 = vmul.f32 %v2851_v60, %v3604_v8  ;;  %v834_v0 = vpop.f32.mrb[9].mxu0  ;;  %v920_v2 = vpop.f32.mrb[9].mxu1 }
 0x4fa   :  { %v844_v3 = vmul.f32 %v834_v0, %v3561_v54  ;;  %v929_v4 = vmul.f32 %v920_v2, %v3607_v9 }
 0x4fb   :  { %v932_v5 = vadd.f32 %v930_v63, %v845_v62 }
 0x4fc   :  { %v931_v6 = vadd.f32 %v929_v4, %v844_v3  ;;  %v298_v3 = vld [vmem:[%s3932_s2 + $0xa0] sm:$0xff]  ;;  %v299_v4 = vld [vmem:[%s3932_s2 + $0xb0] sm:$0xff] }
 0x4fe   :  { %2860 = vmatprep.mubr.msk.f32.mxu0 %vm312_vm0, %v931_v6  ;;  %v2510_v6 = vld [vmem:[%s3933_s3 + $0x4] ss:$0 sm:$0xff] }
 0x4ff   :  { %2861 = vmatmul.mubr.msk.f32.vlgmr.msra.gmra.mrb[10].mxu0 %vm312_vm0, %v932_v5  ;;  %v3137_v5 = vpack.c.bf16 %v299_v4, %v298_v3 }
 0x500   :  { %3128 = vmatpush3.bf16.msra.mxu0 %v3125_v36  ;;  %v3734_v36 = vld [vmem:[%s3932_s2 + $0xe0] sm:$0xff] }
 0x501   :  { %3130 = vmatprep.subr.bf16.mxu0 %v3129_v40  ;;  %v3242_v41 = vpack.i.bf16 %v3739_v39, %v3734_v36 }
 0x504   :  { %3132 = vmatpush3.bf16.msra.mxu0 %v3129_v40  ;;  %v3145_v40 = vpack.c.bf16 %v3739_v39, %v3734_v36 }
 0x505   :  { %3134 = vmatprep.subr.bf16.mxu0 %v3133_v44 }
 0x508   :  { %3136 = vmatpush3.bf16.msra.mxu0 %v3133_v44 }
 0x509   :  { %3138 = vmatprep.subr.bf16.mxu0 %v3137_v5 }
 0x50c   :  { %3140 = vmatpush3.bf16.msra.mxu0 %v3137_v5 }
 0x50d   :  { %3162 = vmatprep.subr.msk.bf16.mxu0 %vm3525_vm7, %v3289_v38 }
 0x5d2   :  { %v2862_v7 = vpop.f32.mrb[10].mxu0 }
 0x5d3   :  { %v1031_v59 = vadd.f32 %v2862_v7, %v3512_v29  ;;  %v1021_v8 = vpop.f32.mrb[11].mxu0 }
 0x5d4   :  { %v1030_v11 = vadd.f32 %v1021_v8, %v3508_v25 }
 0x5d5   :  { %v1037_v54 = vadd.f32 %v2507_v10, %v1031_v59 }
 0x5d6   :  { %v1036_v12 = vadd.f32 %v2507_v10, %v1030_v11 }
 0x5d7   :  { %v1042_v9 = vsel %vm1041_vm13, %v1037_v54, 0.0 }
 0x5d8   :  { %1043 = vadd.xlane.f32.xlu1 %v1042_v9  ;;  %v1038_v16 = vsel %vm312_vm0, %v1036_v12, 0.0  ;;  %v2515_v9 = vld [vmem:[%s3933_s3 + $0x5] ss:$0 sm:$0xff] }
 0x5d9   :  { %1039 = vadd.xlane.f32.xlu0 %v1038_v16 }
 0x665   :  { %v1044_v19 = vpop.xlane.xlu1 %1043 }
 0x666   :  { %v1047_v20 = vmul.f32 0.03125, %v1044_v19  ;;  %v1040_v21 = vpop.xlane.xlu0 %1039 }
 0x667   :  { %v1046_v22 = vmul.f32 0.03125, %v1040_v21 }
 0x668   :  { %v1049_v23 = vsub.f32 %v1037_v54, %v1047_v20 }
 0x669   :  { %v1048_v24 = vsub.f32 %v1036_v12, %v1046_v22 }
 0x66a   :  { %v1051_v27 = vmul.f32 %v1049_v23, %v1049_v23 }
 0x66b   :  { %v1050_v26 = vmul.f32 %v1048_v24, %v1048_v24 }
 0x66c   :  { %v1055_v25 = vsel %vm1041_vm13, %v1051_v27, 0.0 }
 0x66d   :  { %v1052_v29 = vsel %vm312_vm0, %v1050_v26, 0.0 }
 0x66e   :  { %1053 = vadd.xlane.f32.xlu0 %v1052_v29 }
 0x672   :  { %1056 = vadd.xlane.f32.xlu0 %v1055_v25 }
 0x6fb   :  { %v1054_v45 = vpop.xlane.xlu0 %1053 }
 0x6fc   :  { %v1058_v48 = vmul.f32 0.03125, %v1054_v45 }
 0x6fe   :  { %v1060_v49 = vadd.f32 1e-05, %v1058_v48 }
 0x6ff   :  { %v1057_v50 = vpop.xlane.xlu0 %1056 }
 0x700   :  { %3259 = vrsqrt.f32 %v1060_v49  ;;  %v1059_v51 = vmul.f32 0.03125, %v1057_v50 }
 0x702   :  { %v1061_v52 = vadd.f32 1e-05, %v1059_v51  ;;  %v2516_v51 = vld [vmem:[%s3933_s3 + $0x6] ss:$0 sm:$0xff] }
 0x704   :  { %3261 = vrsqrt.f32 %v1061_v52 }
 0x70a   :  { %v3260_v53 = vpop.eup %3259 }
 0x70b   :  { %v1064_v56 = vmul.f32 %v3260_v53, %v1048_v24 }
 0x70d   :  { %v1070_v58 = vmul.f32 %v2508_v55, %v1064_v56  ;;  %v2517_v56 = vld [vmem:[%s3933_s3 + $0x7] ss:$0 sm:$0xff] }
 0x70e   :  { %v3262_v60 = vpop.eup %3261 }
 0x70f   :  { %v1065_v62 = vmul.f32 %v3262_v60, %v1049_v23  ;;  %v1076_v63 = vadd.f32 %v2509_v57, %v1070_v58 }
 0x711   :  { %v1071_v0 = vmul.f32 %v2508_v55, %v1065_v62  ;;  %2871 = vmatprep.mubr.msk.f32.mxu1 %vm312_vm0, %v1076_v63 }
 0x713   :  { %v1077_v2 = vadd.f32 %v2509_v57, %v1071_v0 }
 0x715   :  { %2872 = vmatmul.mubr.msk.f32.vlgmr.msra.gmra.mrb[10].mxu1 %vm312_vm0, %v1077_v2 }
 0x716   :  { %3144 = vmatpush3.bf16.msra.mxu1 %v3141_v35 }
 0x717   :  { %3146 = vmatprep.subr.bf16.mxu1 %v3145_v40 }
 0x71a   :  { %3148 = vmatpush3.bf16.msra.mxu1 %v3145_v40 }
 0x7e8   :  { %v2873_v7 = vpop.f32.mrb[10].mxu1 }
 0x7e9   :  { %v1160_v10 = vadd.f32 %v2873_v7, %v2510_v6  ;;  %v1154_v59 = vpop.f32.mrb[11].mxu1 }
 0x7ea   :  { %v1155_v8 = vadd.f32 %v2510_v6, %v1154_v59 }
 0x7eb   :  { %v1164_v54 = vmax.f32 %v1160_v10, 0.0 }
 0x7ec   :  { %v1163_v11 = vmax.f32 %v1155_v8, 0.0 }
 0x7ee   :  { %2890 = vmatprep.mubr.msk.f32.mxu0 %vm1165_vm15, %v1163_v11 }
 0x7ef   :  { %2891 = vmatmul.mubr.msk.f32.vlgmr.msra.gmra.mrb[12].mxu0 %vm1165_vm15, %v1164_v54 }
 0x7f0   :  { %3164 = vmatpush3.bf16.msk.msra.mxu0 %vm3525_vm7, %v3289_v38 }
 0x7f1   :  { %3166 = vmatprep.subr.msk.bf16.mxu0 %vm3537_vm14, %v3289_v38 }
 0x7f4   :  { %3168 = vmatpush3.bf16.msk.msra.mxu0 %vm3537_vm14, %v3289_v38 }
 0x7f5   :  { %2940 = vmatprep.subr.msk.mxu0 %vm764_vm10, %v3614_v13 }
 0x8c2   :  { %v2892_v12 = vpop.f32.mrb[12].mxu0 }
 0x8c3   :  { %v1248_v16 = vadd.f32 %v2892_v12, %v1077_v2  ;;  %v1238_v19 = vpop.f32.mrb[13].mxu0 }
 0x8c4   :  { %v1247_v20 = vadd.f32 %v1238_v19, %v1076_v63  ;;  %v2542_v63 = vld [vmem:[%s3933_s3 + $0x8] ss:$0 sm:$0xff] }
 0x8c5   :  { %v1254_v21 = vadd.f32 %v2515_v9, %v1248_v16 }
 0x8c6   :  { %v1253_v22 = vadd.f32 %v2515_v9, %v1247_v20 }
 0x8c7   :  { %v1258_v23 = vsel %vm1041_vm13, %v1254_v21, 0.0 }
 0x8c8   :  { %1259 = vadd.xlane.f32.xlu0 %v1258_v23  ;;  %v1255_v24 = vsel %vm312_vm0, %v1253_v22, 0.0 }
 0x8c9   :  { %1256 = vadd.xlane.f32.xlu1 %v1255_v24 }
 0x955   :  { %v1260_v26 = vpop.xlane.xlu0 %1259 }
 0x956   :  { %v1262_v29 = vmul.f32 0.03125, %v1260_v26  ;;  %v1257_v27 = vpop.xlane.xlu1 %1256 }
 0x957   :  { %v1261_v25 = vmul.f32 0.03125, %v1257_v27 }
 0x958   :  { %v1264_v28 = vsub.f32 %v1254_v21, %v1262_v29 }
 0x959   :  { %v1263_v30 = vsub.f32 %v1253_v22, %v1261_v25 }
 0x95a   :  { %v1266_v33 = vmul.f32 %v1264_v28, %v1264_v28 }
 0x95b   :  { %v1265_v34 = vmul.f32 %v1263_v30, %v1263_v30 }
 0x95c   :  { %v1270_v14 = vsel %vm1041_vm13, %v1266_v33, 0.0 }
 0x95d   :  { %1271 = vadd.xlane.f32.xlu0 %v1270_v14  ;;  %v1267_v15 = vsel %vm312_vm0, %v1265_v34, 0.0 }
 0x95e   :  { %1268 = vadd.xlane.f32.xlu1 %v1267_v15 }
 0x9ea   :  { %v1272_v42 = vpop.xlane.xlu0 %1271 }
 0x9eb   :  { %v1274_v43 = vmul.f32 0.03125, %v1272_v42  ;;  %v1269_v44 = vpop.xlane.xlu1 %1268 }
 0x9ec   :  { %v1273_v45 = vmul.f32 0.03125, %v1269_v44 }
 0x9ed   :  { %v1276_v48 = vadd.f32 1e-05, %v1274_v43 }
 0x9ee   :  { %v1275_v49 = vadd.f32 1e-05, %v1273_v45 }
 0x9ef   :  { %3263 = vrsqrt.f32 %v1276_v48 }
 0x9f0   :  { %3265 = vrsqrt.f32 %v1275_v49 }
 0x9f9   :  { %v3264_v50 = vpop.eup %3263 }
 0x9fa   :  { %v3266_v52 = vpop.eup %3265  ;;  %v1280_v53 = vmul.f32 %v3264_v50, %v1264_v28 }
 0x9fb   :  { %v1279_v55 = vmul.f32 %v3266_v52, %v1263_v30 }
 0x9fc   :  { %v1286_v57 = vmul.f32 %v2516_v51, %v1280_v53 }
 0x9fd   :  { %v1285_v58 = vmul.f32 %v2516_v51, %v1279_v55 }
 0x9fe   :  { %v3751_v62 = vadd.f32 %v2517_v56, %v1286_v57 }
 0x9ff   :  { %v3749_v60 = vadd.f32 %v2517_v56, %v1285_v58 }
 0xa01   :  { %2901 = vmatprep.mubr.msk.f32.mxu1 %vm312_vm0, %v3749_v60 }
 0xa02   :  { %2902 = vmatmul.mubr.msk.f32.vlgmr.msra.gmra.mrb[12].mxu1 %vm312_vm0, %v3751_v62 }
 0xa03   :  { %2908 = vmatprep.mubr.msk.f32.mxu1 %vm403_vm2, %v3553_v47 }
 0xad5   :  { %v2903_v0 = vpop.f32.mrb[12].mxu1 }
 0xad6   :  { %v1401_v2 = vadd.f32 %v2903_v0, %v2542_v63  ;;  %v1395_v3 = vpop.f32.mrb[13].mxu1 }
 0xad7   :  { %v1396_v4 = vadd.f32 %v2542_v63, %v1395_v3 }
 0xad8   :  { %1410 = vrot.lane.b32.xlu0 %v1401_v2, %s3292_s29  ;;  %v1405_v7 = vmul.f32 0.35355338, %v1401_v2 }
 0xad9   :  { %1408 = vrot.lane.b32.xlu1 %v1396_v4, %s3292_s29  ;;  %v1404_v6 = vmul.f32 0.35355338, %v1396_v4 }
 0xadd   :  { %1490 = vrot.lane.b32.xlu1 %v1396_v4, %s3291_s28 }
 0xae1   :  { %1492 = vrot.lane.b32.xlu1 %v1401_v2, %s3291_s28 }
 0xae5   :  { %3243 = vrot.lane.b32.xlu1 %v3242_v41, %s3294_s30 }
 0xb4a   :  { %v1411_v5 = vpop.permute.xlu0 %1410 }
 0xb4b   :  { %v1409_v10 = vpop.permute.xlu1 %1408  ;;  %v1574_v11 = vmul.f32 %v1411_v5, %v1405_v7 }
 0xb4c   :  { %v3149_v59 = vpack.c.bf16 %v1411_v5, %v1409_v10  ;;  %v1573_v8 = vmul.f32 %v1409_v10, %v1404_v6 }
 0xb4e   :  { %3151 = vmatprep.subr.msk.bf16.mxu1 %vm3566_vm5, %v3149_v59  ;;  %2926 = vmatprep.mubr.msk.f32.mxu0 %vm312_vm0, %v1573_v8  ;;  %v2571_v8 = vld [vmem:[%s3933_s3 + $0x9] ss:$0 sm:$0xff] }
 0xb4f   :  { %3154 = vmatpush3.bf16.msk.msra.mxu1 %vm3566_vm5, %v3149_v59  ;;  %v3771_v54 = vpop.permute.xlu1 %1490  ;;  %2927 = vmatmul.mubr.msk.f32.vlgmr.msra.gmra.mrb[14].mxu0 %vm312_vm0, %v1574_v11 }
 0xb50   :  { %2941 = vmatpush3.msk.msra.mxu0 %vm764_vm10, %v3614_v13 }
 0xb52   :  { %2909 = vmatmul.mubr.msk.f32.vlgmr.msra.gmra.mrb[14].mxu1 %vm403_vm2, %v3579_v1 }
 0xb53   :  { %v3778_v12 = vpop.permute.xlu1 %1492  ;;  %2915 = vmatprep.mubr.msk.f32.mxu1 %vm403_vm2, %v3553_v47 }
 0xb54   :  { %v3155_v9 = vpack.c.bf16 %v3778_v12, %v3771_v54 }
 0xb56   :  { %3157 = vmatprep.subr.msk.bf16.mxu1 %vm3566_vm5, %v3155_v9 }
 0xb57   :  { %3160 = vmatpush3.bf16.msk.msra.mxu1 %vm3566_vm5, %v3155_v9  ;;  %v3244_v45 = vpop.permute.xlu1 %3243 }
 0xb58   :  { %3170 = vmatprep.subr.msk.bf16.mxu1 %vm3525_vm7, %v3289_v38  ;;  %v3246_v49 = vunpack.i.h.bf16 %v3244_v45  ;;  %v3245_v50 = vunpack.i.l.bf16 %v3244_v45 }
 0xb5a   :  { %2916 = vmatmul.mubr.msk.f32.vlgmr.msra.gmra.mrb[16].mxu1 %vm403_vm2, %v3579_v1  ;;  %v3181_v57 = vpack.c.bf16 %v3246_v49, %v3245_v50  ;;  %v2573_v50 = vld [vmem:[%s3933_s3 + $0xb] ss:$0 sm:$0xff] }
 0xb5b   :  { %3172 = vmatpush3.bf16.msk.msra.mxu1 %vm3525_vm7, %v3289_v38  ;;  %vm3296_vm7 = vmmov 0  }
 0xb5c   :  { %3174 = vmatprep.subr.msk.bf16.mxu1 %vm3537_vm14, %v3289_v38 }
 0xb5f   :  { %3176 = vmatpush3.bf16.msk.msra.mxu1 %vm3537_vm14, %v3289_v38  ;;  %v3237_v38 = vpack.i.bf16 %v3727_v18, %v3722_v17 }
 0xb60   :  { %2945 = vmatprep.subr.msk.mxu1 %vm764_vm10, %v3614_v13 }
 0xb61   :  { %3238 = vrot.lane.b32.xlu0 %v3237_v38, %s3294_s30 }
 0xbd3   :  { %v3239_v40 = vpop.permute.xlu0 %3238 }
 0xbd4   :  { %v3241_v42 = vunpack.i.h.bf16 %v3239_v40  ;;  %v3240_v43 = vunpack.i.l.bf16 %v3239_v40 }
 0xbd6   :  { %v3177_v44 = vpack.c.bf16 %v3241_v42, %v3240_v43 }
 0xbd8   :  { %3178 = vmatprep.subr.bf16.mxu0 %v3177_v44 }
 0xc22   :  { %v2928_v47 = vpop.f32.mrb[14].mxu0 }
 0xc23   :  { %v1647_v16 = vpop.f32.mrb[15].mxu0 }
 0xc25   :  { %v2910_v19 = vpop.f32.mrb[14].mxu1 }
 0xc26   :  { %v1481_v20 = vpop.f32.mrb[15].mxu1  ;;  %v1657_v21 = vmul.f32 %v2910_v19, %v1405_v7 }
 0xc27   :  { %v1656_v1 = vmul.f32 %v1481_v20, %v1404_v6 }
 0xc29   :  { %2937 = vmatprep.mubr.msk.f32.mxu1 %vm312_vm0, %v1656_v1 }
 0xc2a   :  { %2938 = vmatmul.mubr.msk.f32.vlgmr.msra.gmra.mrb[18].mxu1 %vm312_vm0, %v1657_v21 }
 0xc2b   :  { %2946 = vmatpush3.msk.msra.mxu1 %vm764_vm10, %v3614_v13 }
 0xc2d   :  { %v2917_v37 = vpop.f32.mrb[16].mxu1 }
 0xc2e   :  { %v1563_v22 = vpop.f32.mrb[17].mxu1 }
 0xcfd   :  { %v2939_v23 = vpop.f32.mrb[18].mxu1 }
 0xcfe   :  { %v1740_v24 = vmax.f32 %v2928_v47, %v2939_v23  ;;  %v1730_v26 = vpop.f32.mrb[19].mxu1 }
 0xcff   :  { %v1739_v29 = vmax.f32 %v1647_v16, %v1730_v26 }
 0xd00   :  { %v1742_v27 = vsub.f32 %v2928_v47, %v1740_v24  ;;  %v1748_v25 = vsub.f32 %v2939_v23, %v1740_v24  ;;  %v2522_v24 = vld [vmem:[%s3932_s2 + $0xc8] sm:$0xff] }
 0xd01   :  { %v1741_v28 = vsub.f32 %v1647_v16, %v1739_v29  ;;  %v1747_v13 = vsub.f32 %v1730_v26, %v1739_v29  ;;  %v2523_v26 = vld [vmem:[%s3932_s2 + $0xd8] sm:$0xff] }
 0xd02   :  { %v1745_v30 = vmul.f32 1.442695, %v1742_v27  ;;  %v1751_v33 = vmul.f32 1.442695, %v1748_v25  ;;  %v3185_v29 = vpack.c.bf16 %v2523_v26, %v2522_v24  ;;  %v2524_v27 = vld [vmem:[%s3932_s2 + $0xe8] sm:$0xff]  ;;  %v2525_v25 = vld [vmem:[%s3932_s2 + $0xf8] sm:$0xff] }
 0xd03   :  { %v1743_v34 = vmul.f32 1.442695, %v1741_v28  ;;  %v1749_v14 = vmul.f32 1.442695, %v1747_v13  ;;  %v3189_v28 = vpack.c.bf16 %v2525_v25, %v2524_v27  ;;  %v2526_v13 = vld [vmem:[%s3932_s2 + $0x100] sm:$0xff]  ;;  %v3295_v24 = vmov 0.0|0.0  }
 0xd04   :  { %3267 = vpow2.f32 %v1745_v30  ;;  %3186 = vmatprep.subr.bf16.mxu1 %v3185_v29  ;;  %v2527_v30 = vld [vmem:[%s3932_s2 + $0x110] sm:$0xff] }
 0xd05   :  { %3269 = vpow2.f32 %v1751_v33  ;;  %v2528_v33 = vld [vmem:[%s3932_s2 + $0x120] sm:$0xff] }
 0xd06   :  { %3271 = vpow2.f32 %v1743_v34  ;;  %v3193_v34 = vpack.c.bf16 %v2527_v30, %v2526_v13 }
 0xd07   :  { %3273 = vpow2.f32 %v1749_v14  ;;  %v2529_v14 = vld [vmem:[%s3932_s2 + $0x130] sm:$0xff] }
 0xd0e   :  { %v3268_v15 = vpop.eup %3267 }
 0xd0f   :  { %v3270_v17 = vpop.eup %3269 }
 0xd10   :  { %v3272_v18 = vpop.eup %3271  ;;  %v1754_v35 = vadd.f32 %v3270_v17, %v3268_v15 }
 0xd11   :  { %v3274_v36 = vpop.eup %3273 }
 0xd12   :  { %3275 = vrcp.f32 %v1754_v35  ;;  %v1753_v39 = vadd.f32 %v3274_v36, %v3272_v18 }
 0xd14   :  { %3277 = vrcp.f32 %v1753_v39 }
 0xd1c   :  { %v3276_v48 = vpop.eup %3275 }
 0xd1d   :  { %v1758_v51 = vmul.f32 %v3276_v48, %v3268_v15  ;;  %v1844_v52 = vmul.f32 %v3276_v48, %v3270_v17  ;;  %v3197_v15 = vpack.c.bf16 %v2529_v14, %v2528_v33  ;;  %v2530_v17 = vld [vmem:[%s3932_s2 + $0x140] sm:$0xff]  ;;  %v2572_v48 = vld [vmem:[%s3933_s3 + $0xa] ss:$0 sm:$0xff]  ;;  %v2580_v33 = vld [vmem:[%s3933_s3 + $0xe] ss:$0 sm:$0xff] }
 0xd1e   :  { %v3278_v53 = vpop.eup %3277 }
 0xd1f   :  { %v1757_v55 = vmul.f32 %v3278_v53, %v3272_v18  ;;  %v1843_v56 = vmul.f32 %v3278_v53, %v3274_v36  ;;  %v2531_v18 = vld [vmem:[%s3932_s2 + $0x150] sm:$0xff] }
 0xd20   :  { %v3201_v35 = vpack.c.bf16 %v2531_v18, %v2530_v17  ;;  %v2581_v17 = vld [vmem:[%s3933_s3 + $0xf] ss:$0 sm:$0xff] }
 0xd21   :  { %2942 = vmatprep.mubr.msk.f32.mxu0 %vm757_vm12, %v1757_v55  ;;  %2947 = vmatprep.mubr.msk.f32.mxu1 %vm757_vm12, %v1843_v56 }
 0xd22   :  { %2943 = vmatmul.mubr.msk.f32.vlgmr.msra.gmra.mrb[16].mxu0 %vm757_vm12, %v1758_v51  ;;  %2948 = vmatmul.mubr.msk.f32.vlgmr.msra.gmra.mrb[20].mxu1 %vm757_vm12, %v1844_v52 }
 0xd23   :  { %3180 = vmatpush3.bf16.msra.mxu0 %v3177_v44  ;;  %3188 = vmatpush3.bf16.msra.mxu1 %v3185_v29 }
 0xd24   :  { %3182 = vmatprep.subr.bf16.mxu0 %v3181_v57  ;;  %3190 = vmatprep.subr.bf16.mxu1 %v3189_v28 }
 0xd27   :  { %3184 = vmatpush3.bf16.msra.mxu0 %v3181_v57  ;;  %3192 = vmatpush3.bf16.msra.mxu1 %v3189_v28 }
 0xd28   :  { %3194 = vmatprep.subr.bf16.mxu0 %v3193_v34  ;;  %3209 = vmatprep.subr.bf16.mxu1 %v3295_v24 }
 0xdf5   :  { %v2944_v58 = vpop.f32.mrb[16].mxu0  ;;  %v2949_v63 = vpop.f32.mrb[20].mxu1 }
 0xdf6   :  { %v1842_v0 = vmul.f32 %v2944_v58, %v3778_v12  ;;  %v1927_v2 = vmul.f32 %v2949_v63, %v2917_v37  ;;  %v1831_v3 = vpop.f32.mrb[17].mxu0  ;;  %v1917_v4 = vpop.f32.mrb[21].mxu1  ;;  %v2532_v58 = vld [vmem:[%s3932_s2 + $0x160] sm:$0xff]  ;;  %v2533_v63 = vld [vmem:[%s3932_s2 + $0x170] sm:$0xff] }
 0xdf7   :  { %v1841_v5 = vmul.f32 %v1831_v3, %v3771_v54  ;;  %v1926_v6 = vmul.f32 %v1917_v4, %v1563_v22 }
 0xdf8   :  { %v1929_v7 = vadd.f32 %v1927_v2, %v1842_v0  ;;  %v3205_v0 = vpack.c.bf16 %v2533_v63, %v2532_v58  ;;  %v2574_v2 = vld [vmem:[%s3933_s3 + $0xc] ss:$0 sm:$0xff] }
 0xdf9   :  { %v1928_v10 = vadd.f32 %v1926_v6, %v1841_v5 }
 0xdfb   :  { %2958 = vmatprep.mubr.msk.f32.mxu0 %vm312_vm0, %v1928_v10 }
 0xdfc   :  { %2959 = vmatmul.mubr.msk.f32.vlgmr.msra.gmra.mrb[18].mxu0 %vm312_vm0, %v1929_v7 }
 0xdfd   :  { %3196 = vmatpush3.bf16.msra.mxu0 %v3193_v34 }
 0xdfe   :  { %3198 = vmatprep.subr.bf16.mxu0 %v3197_v15 }
 0xe01   :  { %3200 = vmatpush3.bf16.msra.mxu0 %v3197_v15 }
 0xe02   :  { %3202 = vmatprep.subr.bf16.mxu0 %v3201_v35 }
 0xe05   :  { %3204 = vmatpush3.bf16.msra.mxu0 %v3201_v35  ;;  %v69_v35 = vmul.u32 5, %v3516_v31 }
 0xe06   :  { %3206 = vmatprep.subr.bf16.mxu0 %v3205_v0 }
 0xe07   :  { %vm70_vm14 = vcmp.eq.s32.totalorder %v3518_v32, %v69_v35 }
 0xe09   :  { %3208 = vmatpush3.bf16.msra.mxu0 %v3205_v0 }
 0xecf   :  { %v2960_v59 = vpop.f32.mrb[18].mxu0 }
 0xed0   :  { %v2028_v11 = vadd.f32 %v2960_v59, %v3751_v62  ;;  %v2018_v12 = vpop.f32.mrb[19].mxu0 }
 0xed1   :  { %v2027_v9 = vadd.f32 %v2018_v12, %v3749_v60 }
 0xed2   :  { %v2034_v47 = vadd.f32 %v2571_v8, %v2028_v11 }
 0xed3   :  { %v2033_v16 = vadd.f32 %v2571_v8, %v2027_v9  ;;  %v2579_v8 = vld [vmem:[%s3933_s3 + $0xd] ss:$0 sm:$0xff] }
 0xed4   :  { %v2038_v54 = vsel %vm1041_vm13, %v2034_v47, 0.0 }
 0xed5   :  { %2039 = vadd.xlane.f32.xlu1 %v2038_v54  ;;  %v2035_v19 = vsel %vm312_vm0, %v2033_v16, 0.0 }
 0xed6   :  { %2036 = vadd.xlane.f32.xlu0 %v2035_v19 }
 0xf62   :  { %v2040_v20 = vpop.xlane.xlu1 %2039 }
 0xf63   :  { %v2042_v1 = vmul.f32 0.03125, %v2040_v20  ;;  %v2037_v21 = vpop.xlane.xlu0 %2036 }
 0xf64   :  { %v2041_v37 = vmul.f32 0.03125, %v2037_v21 }
 0xf65   :  { %v2044_v22 = vsub.f32 %v2034_v47, %v2042_v1 }
 0xf66   :  { %v2043_v38 = vsub.f32 %v2033_v16, %v2041_v37 }
 0xf67   :  { %v2046_v23 = vmul.f32 %v2044_v22, %v2044_v22 }
 0xf68   :  { %v2045_v41 = vmul.f32 %v2043_v38, %v2043_v38 }
 0xf69   :  { %v2050_v60 = vsel %vm1041_vm13, %v2046_v23, 0.0 }
 0xf6a   :  { %v2047_v62 = vsel %vm312_vm0, %v2045_v41, 0.0 }
 0xf6b   :  { %2048 = vadd.xlane.f32.xlu0 %v2047_v62 }
 0xf6f   :  { %2051 = vadd.xlane.f32.xlu0 %v2050_v60 }
 0xff8   :  { %v2049_v36 = vpop.xlane.xlu0 %2048 }
 0xff9   :  { %v2053_v39 = vmul.f32 0.03125, %v2049_v36 }
 0xffb   :  { %v2055_v40 = vadd.f32 1e-05, %v2053_v39 }
 0xffc   :  { %v2052_v42 = vpop.xlane.xlu0 %2051 }
 0xffd   :  { %3279 = vrsqrt.f32 %v2055_v40  ;;  %v2054_v43 = vmul.f32 0.03125, %v2052_v42 }
 0xfff   :  { %v2056_v44 = vadd.f32 1e-05, %v2054_v43  ;;  %v2477_v43 = vsel %vm70_vm14, 1.0, %v3290_v46 }
0x1001   :  { %3281 = vrsqrt.f32 %v2056_v44 }
0x1007   :  { %v3280_v45 = vpop.eup %3279 }
0x1008   :  { %v2059_v49 = vmul.f32 %v3280_v45, %v2043_v38 }
0x100a   :  { %v2065_v51 = vmul.f32 %v2572_v48, %v2059_v49 }
0x100b   :  { %v3282_v52 = vpop.eup %3281 }
0x100c   :  { %v2060_v53 = vmul.f32 %v3282_v52, %v2044_v22  ;;  %v2071_v55 = vadd.f32 %v2573_v50, %v2065_v51  ;;  %v121_v51 = vld [vmem:[%s3930_s1 + $0x180] sm:$0xff] }
0x100e   :  { %v2066_v56 = vmul.f32 %v2572_v48, %v2060_v53  ;;  %2969 = vmatprep.mubr.msk.f32.mxu1 %vm312_vm0, %v2071_v55  ;;  %v123_v53 = vld [vmem:[%s3930_s1 + $0x190] sm:$0xff] }
0x1010   :  { %v2072_v57 = vadd.f32 %v2573_v50, %v2066_v56 }
0x1012   :  { %2970 = vmatmul.mubr.msk.f32.vlgmr.msra.gmra.mrb[22].mxu1 %vm312_vm0, %v2072_v57 }
0x1013   :  { %2995 = vmatprep.mubr.msk.f32.mxu1 %vm3296_vm7, %v3290_v46 }
0x10e5   :  { %v2971_v3 = vpop.f32.mrb[22].mxu1 }
0x10e6   :  { %v2155_v4 = vadd.f32 %v2971_v3, %v2574_v2  ;;  %v2149_v5 = vpop.f32.mrb[23].mxu1 }
0x10e7   :  { %v2150_v6 = vadd.f32 %v2574_v2, %v2149_v5  ;;  %v2584_v2 = vld [vmem:[%s3930_s1 + $0x1a0] ss:$0 sm:$0xff] }
0x10e8   :  { %v2159_v10 = vmax.f32 %v2155_v4, 0.0  ;;  %v2585_v4 = vld [vmem:[%s3930_s1 + $0x1a1] ss:$0 sm:$0xff] }
0x10e9   :  { %v2158_v7 = vmax.f32 %v2150_v6, 0.0 }
0x10eb   :  { %2988 = vmatprep.mubr.msk.f32.mxu0 %vm1165_vm15, %v2158_v7  ;;  %v2586_v7 = vld [vmem:[%s3930_s1 + $0x1a2] ss:$0 sm:$0xff] }
0x10ec   :  { %2989 = vmatmul.mubr.msk.f32.vlgmr.msra.gmra.mrb[20].mxu0 %vm1165_vm15, %v2159_v10 }
0x11bf   :  { %v2990_v59 = vpop.f32.mrb[20].mxu0 }
0x11c0   :  { %v2242_v11 = vadd.f32 %v2990_v59, %v2072_v57  ;;  %v2232_v12 = vpop.f32.mrb[21].mxu0 }
0x11c1   :  { %v2241_v9 = vadd.f32 %v2232_v12, %v2071_v55  ;;  %v124_v55 = vld [vmem:[%s3930_s1 + $0x198] sm:$0xff] }
0x11c2   :  { %v2248_v47 = vadd.f32 %v2579_v8, %v2242_v11  ;;  %v3217_v56 = vpack.c.bf16 %v124_v55, %v123_v53 }
0x11c3   :  { %v2247_v16 = vadd.f32 %v2579_v8, %v2241_v9 }
0x11c4   :  { %v2252_v54 = vsel %vm1041_vm13, %v2248_v47, 0.0 }
0x11c5   :  { %2253 = vadd.xlane.f32.xlu0 %v2252_v54  ;;  %v2249_v19 = vsel %vm312_vm0, %v2247_v16, 0.0 }
0x11c6   :  { %2250 = vadd.xlane.f32.xlu1 %v2249_v19 }
0x1252   :  { %v2254_v20 = vpop.xlane.xlu0 %2253 }
0x1253   :  { %v2256_v1 = vmul.f32 0.03125, %v2254_v20  ;;  %v2251_v21 = vpop.xlane.xlu1 %2250 }
0x1254   :  { %v2255_v37 = vmul.f32 0.03125, %v2251_v21 }
0x1255   :  { %v2258_v22 = vsub.f32 %v2248_v47, %v2256_v1 }
0x1256   :  { %v2257_v38 = vsub.f32 %v2247_v16, %v2255_v37 }
0x1257   :  { %v2260_v41 = vmul.f32 %v2258_v22, %v2258_v22 }
0x1258   :  { %v2259_v62 = vmul.f32 %v2257_v38, %v2257_v38 }
0x1259   :  { %v2264_v23 = vsel %vm1041_vm13, %v2260_v41, 0.0 }
0x125a   :  { %2265 = vadd.xlane.f32.xlu0 %v2264_v23  ;;  %v2261_v60 = vsel %vm312_vm0, %v2259_v62, 0.0 }
0x125b   :  { %2262 = vadd.xlane.f32.xlu1 %v2261_v60 }
0x12e7   :  { %v2266_v26 = vpop.xlane.xlu0 %2265 }
0x12e8   :  { %v2268_v29 = vmul.f32 0.03125, %v2266_v26  ;;  %v2263_v27 = vpop.xlane.xlu1 %2262 }
0x12e9   :  { %v2267_v25 = vmul.f32 0.03125, %v2263_v27 }
0x12ea   :  { %v2270_v28 = vadd.f32 1e-05, %v2268_v29 }
0x12eb   :  { %v2269_v13 = vadd.f32 1e-05, %v2267_v25 }
0x12ec   :  { %3283 = vrsqrt.f32 %v2270_v28 }
0x12ed   :  { %3285 = vrsqrt.f32 %v2269_v13 }
0x12f6   :  { %v3284_v30 = vpop.eup %3283 }
0x12f7   :  { %v3286_v34 = vpop.eup %3285  ;;  %v2274_v14 = vmul.f32 %v3284_v30, %v2258_v22 }
0x12f8   :  { %v2273_v15 = vmul.f32 %v3286_v34, %v2257_v38 }
0x12f9   :  { %v2280_v18 = vmul.f32 %v2580_v33, %v2274_v14 }
0x12fa   :  { %v2279_v36 = vmul.f32 %v2580_v33, %v2273_v15 }
0x12fb   :  { %v2286_v39 = vadd.f32 %v2581_v17, %v2280_v18 }
0x12fc   :  { %v2285_v40 = vadd.f32 %v2581_v17, %v2279_v36 }
0x12fe   :  { %v3210_v42 = vpack.c.bf16 %v2286_v39, %v2285_v40 }
0x1300   :  { %3212 = vmatpush3.bf16.msk.msra.mxu1 %vm3566_vm5, %v3210_v42 }
0x1301   :  { %3213 = vmatprep.subr.bf16.mxu1 %v3295_v24 }
0x1303   :  { %2996 = vmatmul.mubr.msk.f32.vlgmr.msra.gmra.mrb[24].mxu1 %vm403_vm2, %v2477_v43 }
0x1304   :  { %3006 = vmatprep.mubr.msk.f32.mxu1 %vm3296_vm7, %v3290_v46  ;;  %v122_v46 = vld [vmem:[%s3930_s1 + $0x188] sm:$0xff] }
0x1305   :  { %v3214_v52 = vpack.c.bf16 %v122_v46, %v121_v51 }
0x1307   :  { %3215 = vmatpush3.bf16.msra.mxu1 %v3214_v52 }
0x1308   :  { %3216 = vmatprep.subr.bf16.mxu1 %v3295_v24 }
0x130b   :  { %3218 = vmatpush3.bf16.msra.mxu1 %v3217_v56 }
0x13d6   :  { %v2359_v44 = vpop.f32.mrb[24].mxu1 }
0x13d7   :  { %v2997_v45 = vpop.f32.mrb[25].mxu1  ;;  %v2363_v31 = vsel %vm312_vm0, %v2359_v44, 0.0 }
0x13d8   :  { %2364 = vadd.xlane.f32.xlu1 %v2363_v31 }
0x1465   :  { %v2365_v48 = vpop.xlane.xlu1 %2364 }
0x1466   :  { %v2366_v49 = vmul.f32 0.03125, %v2365_v48 }
0x1468   :  { %v2367_v32 = vsub.f32 %v2359_v44, %v2366_v49 }
0x146a   :  { %v2368_v50 = vmul.f32 %v2367_v32, %v2367_v32 }
0x146c   :  { %v2369_v61 = vsel %vm312_vm0, %v2368_v50, 0.0 }
0x146d   :  { %2370 = vadd.xlane.f32.xlu0 %v2369_v61 }
0x14fa   :  { %v2371_v57 = vpop.xlane.xlu0 %2370 }
0x14fb   :  { %v2372_v58 = vmul.f32 0.03125, %v2371_v57 }
0x14fd   :  { %v2373_v63 = vadd.f32 1e-05, %v2372_v58 }
0x14ff   :  { %3287 = vrsqrt.f32 %v2373_v63 }
0x1509   :  { %v3288_v0 = vpop.eup %3287 }
0x150a   :  { %v2375_v3 = vmul.f32 %v3288_v0, %v2367_v32 }
0x150c   :  { %v2380_v5 = vmul.f32 %v2584_v2, %v2375_v3 }
0x150e   :  { %v2385_v6 = vadd.f32 %v2585_v4, %v2380_v5 }
0x1510   :  { %3007 = vmatmul.mubr.msk.f32.vlgmr.msra.gmra.mrb[26].mxu1 %vm312_vm0, %v2385_v6 }
0x15e3   :  { %v2459_v10 = vpop.f32.mrb[26].mxu1 }
0x15e4   :  { %v2460_v59 = vadd.f32 %v2586_v7, %v2459_v10  ;;  %v3008_v8 = vpop.f32.mrb[27].mxu1 }
0x15e6   :  { %2463 = vst [vmem:[%s3934_s4] sm:$0xff] %v2460_v59 }

</bundles_post_ra>
